<compile_context>
chip_gen: v7x
topology: tpu7x:2x2x1
jax: 0.10.0
libtpu: 0.0.40
codegen_flags: <defaults>
</compile_context>

<pallas_src>
import functools

import numpy as np
import jax
import jax.numpy as jnp
from jax.experimental import pallas as pl
from jax.experimental.pallas import tpu as pltpu

LN_EPS = 1e-5
_INV_SQRT2 = 0.7071067811865476


def _row_tile(M, tm_max=256):
    # Full-dim block when small (always legal); otherwise 256 (multiple of 8),
    # partial edge blocks handled by the cdiv grid.
    return M if M <= tm_max else tm_max


def _erf_approx(x):
    # Exact-GELU erf via Abramowitz & Stegun 7.1.26 (|err| < 1.5e-7), built
    # from exp/VPU ops only (lax.erf lowering on Mosaic is not guaranteed).
    a1, a2, a3, a4, a5 = (0.254829592, -0.284496736, 1.421413741,
                          -1.453152027, 1.061405429)
    p = 0.3275911
    sign = jnp.where(x >= 0.0, 1.0, -1.0)
    ax = jnp.abs(x)
    t = 1.0 / (1.0 + p * ax)
    poly = ((((a5 * t + a4) * t + a3) * t + a2) * t + a1) * t
    return sign * (1.0 - poly * jnp.exp(-ax * ax))


def _gelu_exact(x):
    return 0.5 * x * (1.0 + _erf_approx(x * _INV_SQRT2))


def _layernorm_f32(x, g_ref, b_ref):
    mean = jnp.mean(x, axis=-1, keepdims=True)
    xc = x - mean
    var = jnp.mean(xc * xc, axis=-1, keepdims=True)
    xn = xc * jax.lax.rsqrt(var + LN_EPS)
    return xn * g_ref[...].astype(jnp.float32) + b_ref[...].astype(jnp.float32)


# -----------------------------------------------------------------------------
# Fused LayerNorm + triple projection:  y = LN(x);  (y@W0+b0, y@W1+b1, y@W2+b2)
# with W = [W0 | W1 | W2]  (shape [E, 3E]).
# -----------------------------------------------------------------------------
def _ln_proj3_kernel(x_ref, g_ref, b_ref, w_ref, bias_ref, o0_ref, o1_ref, o2_ref):
    x = x_ref[...].astype(jnp.float32)
    xn = _layernorm_f32(x, g_ref, b_ref)
    acc = jnp.dot(xn.astype(jnp.bfloat16), w_ref[...],
                  preferred_element_type=jnp.float32)
    acc = acc + bias_ref[...].astype(jnp.float32)
    E = o0_ref.shape[-1]
    o0_ref[...] = acc[:, 0:E].astype(o0_ref.dtype)
    o1_ref[...] = acc[:, E:2 * E].astype(o1_ref.dtype)
    o2_ref[...] = acc[:, 2 * E:3 * E].astype(o2_ref.dtype)


def ln_proj3_pallas(x2, gamma, beta, w3, b3):
    M, E = x2.shape
    N3 = w3.shape[1]
    assert N3 == 3 * E
    tm = _row_tile(M)
    out_sds = jax.ShapeDtypeStruct((M, E), x2.dtype)
    return pl.pallas_call(
        _ln_proj3_kernel,
        out_shape=(out_sds, out_sds, out_sds),
        grid_spec=pltpu.PrefetchScalarGridSpec(
            num_scalar_prefetch=0,
            grid=(pl.cdiv(M, tm),),
            in_specs=[
                pl.BlockSpec((tm, E), lambda i: (i, 0)),
                pl.BlockSpec((1, E), lambda i: (0, 0)),
                pl.BlockSpec((1, E), lambda i: (0, 0)),
                pl.BlockSpec((E, N3), lambda i: (0, 0)),   # streamed from HBM once
                pl.BlockSpec((1, N3), lambda i: (0, 0)),
            ],
            out_specs=[
                pl.BlockSpec((tm, E), lambda i: (i, 0)),
                pl.BlockSpec((tm, E), lambda i: (i, 0)),
                pl.BlockSpec((tm, E), lambda i: (i, 0)),
            ],
        ),
        compiler_params=pltpu.CompilerParams(dimension_semantics=("parallel",)),
    )(x2, gamma.reshape(1, E), beta.reshape(1, E), w3, b3.reshape(1, N3))


# -----------------------------------------------------------------------------
# Fused LayerNorm + fc1 + exact GELU.  Hidden activation stored as bf16.
# -----------------------------------------------------------------------------
def _ln_ff1_kernel(x_ref, g_ref, b_ref, w_ref, bias_ref, o_ref):
    x = x_ref[...].astype(jnp.float32)
    xn = _layernorm_f32(x, g_ref, b_ref)
    acc = jnp.dot(xn.astype(jnp.bfloat16), w_ref[...],
                  preferred_element_type=jnp.float32)
    acc = acc + bias_ref[...].astype(jnp.float32)
    o_ref[...] = _gelu_exact(acc).astype(o_ref.dtype)


def ln_ff1_pallas(x2, gamma, beta, w1, b1):
    M, E = x2.shape
    N = w1.shape[1]
    tm = _row_tile(M)
    return pl.pallas_call(
        _ln_ff1_kernel,
        out_shape=jax.ShapeDtypeStruct((M, N), jnp.bfloat16),
        grid_spec=pltpu.PrefetchScalarGridSpec(
            num_scalar_prefetch=0,
            grid=(pl.cdiv(M, tm),),
            in_specs=[
                pl.BlockSpec((tm, E), lambda i: (i, 0)),
                pl.BlockSpec((1, E), lambda i: (0, 0)),
                pl.BlockSpec((1, E), lambda i: (0, 0)),
                pl.BlockSpec((E, N), lambda i: (0, 0)),
                pl.BlockSpec((1, N), lambda i: (0, 0)),
            ],
            out_specs=pl.BlockSpec((tm, N), lambda i: (i, 0)),
        ),
        compiler_params=pltpu.CompilerParams(dimension_semantics=("parallel",)),
    )(x2, gamma.reshape(1, E), beta.reshape(1, E), w1, b1.reshape(1, N))


# -----------------------------------------------------------------------------
# Matmul + bias + fused residual add:  out = x @ W + b + resid
# -----------------------------------------------------------------------------
def _proj_res_kernel(x_ref, w_ref, bias_ref, r_ref, o_ref):
    xb = x_ref[...]
    if xb.dtype != jnp.bfloat16:
        xb = xb.astype(jnp.bfloat16)
    acc = jnp.dot(xb, w_ref[...], preferred_element_type=jnp.float32)
    acc = acc + bias_ref[...].astype(jnp.float32) + r_ref[...].astype(jnp.float32)
    o_ref[...] = acc.astype(o_ref.dtype)


def proj_res_pallas(x2, w, b, resid):
    M, K = x2.shape
    N = w.shape[1]
    assert resid.shape == (M, N)
    tm = _row_tile(M)
    return pl.pallas_call(
        _proj_res_kernel,
        out_shape=jax.ShapeDtypeStruct((M, N), resid.dtype),
        grid_spec=pltpu.PrefetchScalarGridSpec(
            num_scalar_prefetch=0,
            grid=(pl.cdiv(M, tm),),
            in_specs=[
                pl.BlockSpec((tm, K), lambda i: (i, 0)),
                pl.BlockSpec((K, N), lambda i: (0, 0)),
                pl.BlockSpec((1, N), lambda i: (0, 0)),
                pl.BlockSpec((tm, N), lambda i: (i, 0)),
            ],
            out_specs=pl.BlockSpec((tm, N), lambda i: (i, 0)),
        ),
        compiler_params=pltpu.CompilerParams(dimension_semantics=("parallel",)),
    )(x2, w, b.reshape(1, N), resid)


# -----------------------------------------------------------------------------
# Attention: per (batch, q-tile) program, heads sliced in-kernel from lane-dense
# (1, L, E) blocks (no head split/merge transposes in the wrapper).
# Also emits the attention weights [B, H, Lq, Lk] (returned by the module).
# -----------------------------------------------------------------------------
def _attention_kernel(q_ref, k_ref, v_ref, o_ref, w_ref, *, num_heads, scale):
    E = q_ref.shape[-1]
    Dh = E // num_heads
    # Fold the softmax scale into q once (O(Lq*E) instead of O(Lq*Lk) per head).
    qb = (q_ref[0].astype(jnp.float32) * scale).astype(jnp.bfloat16)   # [tq, E]
    kb = k_ref[0].astype(jnp.bfloat16)                                 # [Lk, E]
    vb = v_ref[0].astype(jnp.bfloat16)                                 # [Lk, E]
    outs = []
    for h in range(num_heads):
        sl = slice(h * Dh, (h + 1) * Dh)
        s = jnp.einsum("qd,kd->qk", qb[:, sl], kb[:, sl],
                       preferred_element_type=jnp.float32)             # [tq, Lk]
        m = jnp.max(s, axis=-1, keepdims=True)
        p = jnp.exp(s - m)
        p = p / jnp.sum(p, axis=-1, keepdims=True)   # exact divide: weights returned
        w_ref[0, h] = p.astype(w_ref.dtype)
        outs.append(jnp.dot(p.astype(jnp.bfloat16), vb[:, sl],
                            preferred_element_type=jnp.float32))
    o_ref[0] = jnp.concatenate(outs, axis=-1).astype(o_ref.dtype)


def attention_pallas(q, k, v, *, num_heads):
    # q: [B, Lq, E], k/v: [B, Lk, E]
    B, Lq, E = q.shape
    Lk = k.shape[1]
    Dh = E // num_heads
    scale = Dh ** -0.5
    tq = _row_tile(Lq)
    nq = pl.cdiv(Lq, tq)
    kern = functools.partial(_attention_kernel, num_heads=num_heads, scale=scale)
    o, w = pl.pallas_call(
        kern,
        out_shape=(
            jax.ShapeDtypeStruct((B, Lq, E), q.dtype),
            jax.ShapeDtypeStruct((B, num_heads, Lq, Lk), q.dtype),
        ),
        grid_spec=pltpu.PrefetchScalarGridSpec(
            num_scalar_prefetch=0,
            grid=(B, nq),
            in_specs=[
                pl.BlockSpec((1, tq, E), lambda b, i: (b, i, 0)),
                pl.BlockSpec((1, Lk, E), lambda b, i: (b, 0, 0)),   # fetched once per b
                pl.BlockSpec((1, Lk, E), lambda b, i: (b, 0, 0)),
            ],
            out_specs=[
                pl.BlockSpec((1, tq, E), lambda b, i: (b, i, 0)),
                pl.BlockSpec((1, num_heads, tq, Lk), lambda b, i: (b, 0, i, 0)),
            ],
        ),
        compiler_params=pltpu.CompilerParams(
            dimension_semantics=("parallel", "parallel")),
    )(q, k, v)
    return o, w


# -----------------------------------------------------------------------------
# Module-level forward.
# -----------------------------------------------------------------------------
def cross_modal_attention(img_features, time_features, fp, *, num_heads):
    B, Li, E = img_features.shape
    Lt = time_features.shape[1]
    img2 = img_features.reshape(B * Li, E)
    time2 = time_features.reshape(B * Lt, E)

    # Fused LN + three projections per modality (one HBM read of each activation).
    q_i2t, k_t2i, v_t2i = ln_proj3_pallas(
        img2, fp["norm_img_w"], fp["norm_img_b"], fp["img_proj_w"], fp["img_proj_b"])
    q_t2i, k_i2t, v_i2t = ln_proj3_pallas(
        time2, fp["norm_time_w"], fp["norm_time_b"], fp["time_proj_w"], fp["time_proj_b"])

    o_i2t, w_i2t = attention_pallas(q_i2t.reshape(B, Li, E),
                                    k_i2t.reshape(B, Lt, E),
                                    v_i2t.reshape(B, Lt, E), num_heads=num_heads)
    o_t2i, w_t2i = attention_pallas(q_t2i.reshape(B, Lt, E),
                                    k_t2i.reshape(B, Li, E),
                                    v_t2i.reshape(B, Li, E), num_heads=num_heads)

    # Output projection with the residual add fused into the epilogue.
    img_res = proj_res_pallas(o_i2t.reshape(B * Li, E), fp["i2t_o_w"], fp["i2t_o_b"], img2)
    time_res = proj_res_pallas(o_t2i.reshape(B * Lt, E), fp["t2i_o_w"], fp["t2i_o_b"], time2)

    # FF: fused LN + fc1 + exact GELU (bf16 hidden), then fc2 + residual fused.
    h_img = ln_ff1_pallas(img_res, fp["norm_img_out_w"], fp["norm_img_out_b"],
                          fp["ff_img_w1"], fp["ff_img_b1"])
    img_out = proj_res_pallas(h_img, fp["ff_img_w2"], fp["ff_img_b2"], img_res)

    h_time = ln_ff1_pallas(time_res, fp["norm_time_out_w"], fp["norm_time_out_b"],
                           fp["ff_time_w1"], fp["ff_time_b1"])
    time_out = proj_res_pallas(h_time, fp["ff_time_w2"], fp["ff_time_b2"], time_res)

    return (img_out.reshape(B, Li, E), time_out.reshape(B, Lt, E), w_i2t, w_t2i)


def fuse_params(params):
    """Build kernel-ready params (concatenated projections, bf16 weights). Run
    once outside jit so the concat/cast is not re-done every forward call."""
    f32 = lambda a: jnp.asarray(a, jnp.float32)
    wbf = lambda a: jnp.asarray(a, jnp.bfloat16)
    i2t, t2i = params["img2time"], params["time2img"]
    ffi, fft = params["ff_img"], params["ff_time"]
    fp = {}
    for name in ("norm_img", "norm_time", "norm_img_out", "norm_time_out"):
        fp[f"{name}_w"] = f32(params[f"{name}_w"])
        fp[f"{name}_b"] = f32(params[f"{name}_b"])
    # LN(img) feeds img2time's Q and time2img's K/V; LN(time) the converse.
    fp["img_proj_w"] = wbf(jnp.concatenate([i2t["q_w"], t2i["k_w"], t2i["v_w"]], axis=1))
    fp["img_proj_b"] = f32(jnp.concatenate([i2t["q_b"], t2i["k_b"], t2i["v_b"]]))
    fp["time_proj_w"] = wbf(jnp.concatenate([t2i["q_w"], i2t["k_w"], i2t["v_w"]], axis=1))
    fp["time_proj_b"] = f32(jnp.concatenate([t2i["q_b"], i2t["k_b"], i2t["v_b"]]))
    fp["i2t_o_w"], fp["i2t_o_b"] = wbf(i2t["o_w"]), f32(i2t["o_b"])
    fp["t2i_o_w"], fp["t2i_o_b"] = wbf(t2i["o_w"]), f32(t2i["o_b"])
    fp["ff_img_w1"], fp["ff_img_b1"] = wbf(ffi["w1"]), f32(ffi["b1"])
    fp["ff_img_w2"], fp["ff_img_b2"] = wbf(ffi["w2"]), f32(ffi["b2"])
    fp["ff_time_w1"], fp["ff_time_b1"] = wbf(fft["w1"]), f32(fft["b1"])
    fp["ff_time_w2"], fp["ff_time_b2"] = wbf(fft["w2"]), f32(fft["b2"])
    return fp


# -----------------------------------------------------------------------------
# Parameter init (nn.Linear / nn.LayerNorm style, weights stored [in, out]) and
# a plain-JAX f32 reference for verification.
# -----------------------------------------------------------------------------
def _init_linear(key, fan_in, fan_out):
    kw, kb = jax.random.split(key)
    bound = 1.0 / np.sqrt(fan_in)
    w = jax.random.uniform(kw, (fan_in, fan_out), jnp.float32, -bound, bound)
    b = jax.random.uniform(kb, (fan_out,), jnp.float32, -bound, bound)
    return w, b


def _init_mha(key, E):
    ks = jax.random.split(key, 4)
    p = {}
    for name, kk in zip(("q", "k", "v", "o"), ks):
        w, b = _init_linear(kk, E, E)
        p[f"{name}_w"], p[f"{name}_b"] = w, b
    return p


def _init_ff(key, E):
    k1, k2 = jax.random.split(key)
    w1, b1 = _init_linear(k1, E, 4 * E)
    w2, b2 = _init_linear(k2, 4 * E, E)
    return {"w1": w1, "b1": b1, "w2": w2, "b2": b2}


def _init_ln(key, E):
    kg, kb = jax.random.split(key)
    g = 1.0 + 0.1 * jax.random.normal(kg, (E,), jnp.float32)
    b = 0.1 * jax.random.normal(kb, (E,), jnp.float32)
    return g, b


def _ref_layernorm(x, g, b):
    mean = jnp.mean(x, axis=-1, keepdims=True)
    var = jnp.mean((x - mean) ** 2, axis=-1, keepdims=True)
    return (x - mean) / jnp.sqrt(var + LN_EPS) * g + b


def _ref_mha(q_in, k_in, v_in, p, H):
    B, Lq, E = q_in.shape
    Lk = k_in.shape[1]
    Dh = E // H
    q = q_in @ p["q_w"] + p["q_b"]
    k = k_in @ p["k_w"] + p["k_b"]
    v = v_in @ p["v_w"] + p["v_b"]
    q = q.reshape(B, Lq, H, Dh).transpose(0, 2, 1, 3)
    k = k.reshape(B, Lk, H, Dh).transpose(0, 2, 1, 3)
    v = v.reshape(B, Lk, H, Dh).transpose(0, 2, 1, 3)
    s = jnp.einsum("bhqd,bhkd->bhqk", q, k) * (Dh ** -0.5)
    w = jax.nn.softmax(s, axis=-1)
    o = jnp.einsum("bhqk,bhkd->bhqd", w, v)
    o = o.transpose(0, 2, 1, 3).reshape(B, Lq, E)
    return o @ p["o_w"] + p["o_b"], w


def _ref_ff(x, p):
    h = jax.nn.gelu(x @ p["w1"] + p["b1"], approximate=False)
    return h @ p["w2"] + p["b2"]


def _ref_forward(img, tfeat, params, H):
    img_n = _ref_layernorm(img, params["norm_img_w"], params["norm_img_b"])
    t_n = _ref_layernorm(tfeat, params["norm_time_w"], params["norm_time_b"])
    i2t, i2t_w = _ref_mha(img_n, t_n, t_n, params["img2time"], H)
    t2i, t2i_w = _ref_mha(t_n, img_n, img_n, params["time2img"], H)
    img = img + i2t
    tfeat = tfeat + t2i
    img_ff = _ref_layernorm(img, params["norm_img_out_w"], params["norm_img_out_b"])
    t_ff = _ref_layernorm(tfeat, params["norm_time_out_w"], params["norm_time_out_b"])
    img = img + _ref_ff(img_ff, params["ff_img"])
    tfeat = tfeat + _ref_ff(t_ff, params["ff_time"])
    return img, tfeat, i2t_w, t2i_w


if __name__ == "__main__":
    B, L_IMG, L_TIME, E, H = 2, 8, 8, 32, 4
    assert E % H == 0

    key = jax.random.PRNGKey(0)
    keys = jax.random.split(key, 10)

    img_feats = jax.random.normal(keys[0], (B, L_IMG, E), jnp.float32)
    time_feats = jax.random.normal(keys[1], (B, L_TIME, E), jnp.float32)

    params = {}
    params["norm_img_w"], params["norm_img_b"] = _init_ln(keys[2], E)
    params["norm_time_w"], params["norm_time_b"] = _init_ln(keys[3], E)
    params["norm_img_out_w"], params["norm_img_out_b"] = _init_ln(keys[4], E)
    params["norm_time_out_w"], params["norm_time_out_b"] = _init_ln(keys[5], E)
    params["img2time"] = _init_mha(keys[6], E)
    params["time2img"] = _init_mha(keys[7], E)
    params["ff_img"] = _init_ff(keys[8], E)
    params["ff_time"] = _init_ff(keys[9], E)

    fused = fuse_params(params)

    fwd = jax.jit(functools.partial(cross_modal_attention, num_heads=H))
    img_out, time_out, i2t_w, t2i_w = jax.block_until_ready(
        fwd(img_feats, time_feats, fused))

    assert img_out.shape == (B, L_IMG, E), img_out.shape
    assert time_out.shape == (B, L_TIME, E), time_out.shape
    assert i2t_w.shape == (B, H, L_IMG, L_TIME), i2t_w.shape
    assert t2i_w.shape == (B, H, L_TIME, L_IMG), t2i_w.shape

    # Plain-JAX reference at full f32 matmul precision; tolerance covers the
    # intentional bf16 MXU operands / bf16 hidden activation in the kernels.
    with jax.default_matmul_precision("highest"):
        ref = _ref_forward(img_feats, time_feats, params, H)
    for got, want in zip((img_out, time_out, i2t_w, t2i_w), ref):
        np.testing.assert_allclose(np.asarray(got, np.float32), np.asarray(want),
                                   rtol=2e-2, atol=3e-3)

    print("KERNEL_OK")
</pallas_src>

<mosaic_0001>
module attributes {stable_mosaic.version = 11 : i64} {
  func.func @_ln_proj3_kernel(%arg0: i32, %arg1: memref<16x32xf32, #tpu.memory_space<vmem>>, %arg2: memref<1x32xf32, #tpu.memory_space<vmem>>, %arg3: memref<1x32xf32, #tpu.memory_space<vmem>>, %arg4: memref<32x96xbf16, #tpu.memory_space<vmem>>, %arg5: memref<1x96xf32, #tpu.memory_space<vmem>>, %arg6: memref<16x32xf32, #tpu.memory_space<vmem>>, %arg7: memref<16x32xf32, #tpu.memory_space<vmem>>, %arg8: memref<16x32xf32, #tpu.memory_space<vmem>>) attributes {dimension_semantics = [#tpu.dimension_semantics<parallel>], iteration_bounds = array<i64: 1>, scalar_prefetch = 0 : i64, scratch_operands = 0 : i64, tpu.core_type = #tpu.core_type<tc>, window_params = [{transform_indices = @transform_0, window_bounds = array<i64: 16, 32>}, {pipeline_mode = #tpu.pipeline_mode<synchronous>, transform_indices = @transform_1, window_bounds = array<i64: 1, 32>}, {pipeline_mode = #tpu.pipeline_mode<synchronous>, transform_indices = @transform_2, window_bounds = array<i64: 1, 32>}, {pipeline_mode = #tpu.pipeline_mode<synchronous>, transform_indices = @transform_3, window_bounds = array<i64: 32, 96>}, {pipeline_mode = #tpu.pipeline_mode<synchronous>, transform_indices = @transform_4, window_bounds = array<i64: 1, 96>}, {transform_indices = @transform_5, window_bounds = array<i64: 16, 32>}, {transform_indices = @transform_6, window_bounds = array<i64: 16, 32>}, {transform_indices = @transform_7, window_bounds = array<i64: 16, 32>}]} {
    %c0 = arith.constant 0 : index
    %c0_0 = arith.constant 0 : index
    %0 = vector.load %arg1[%c0, %c0_0] : memref<16x32xf32, #tpu.memory_space<vmem>>, vector<16x32xf32>
    %cst = arith.constant dense<0.000000e+00> : vector<16xf32>
    %1 = vector.multi_reduction <add>, %0, %cst [1] : vector<16x32xf32> to vector<16xf32>
    %2 = vector.shape_cast %1 : vector<16xf32> to vector<16x1xf32>
    %cst_1 = arith.constant 3.200000e+01 : f32
    %3 = vector.broadcast %cst_1 : f32 to vector<16x1xf32>
    %4 = arith.divf %2, %3 : vector<16x1xf32>
    %5 = vector.broadcast %4 : vector<16x1xf32> to vector<16x32xf32>
    %6 = arith.subf %0, %5 : vector<16x32xf32>
    %7 = arith.mulf %6, %6 : vector<16x32xf32>
    %cst_2 = arith.constant dense<0.000000e+00> : vector<16xf32>
    %8 = vector.multi_reduction <add>, %7, %cst_2 [1] : vector<16x32xf32> to vector<16xf32>
    %9 = vector.shape_cast %8 : vector<16xf32> to vector<16x1xf32>
    %cst_3 = arith.constant 3.200000e+01 : f32
    %10 = vector.broadcast %cst_3 : f32 to vector<16x1xf32>
    %11 = arith.divf %9, %10 : vector<16x1xf32>
    %cst_4 = arith.constant 9.99999974E-6 : f32
    %12 = vector.broadcast %cst_4 : f32 to vector<16x1xf32>
    %13 = arith.addf %11, %12 : vector<16x1xf32>
    %14 = math.rsqrt %13 : vector<16x1xf32>
    %15 = vector.broadcast %14 : vector<16x1xf32> to vector<16x32xf32>
    %16 = arith.mulf %6, %15 : vector<16x32xf32>
    %c0_5 = arith.constant 0 : index
    %c0_6 = arith.constant 0 : index
    %17 = vector.load %arg2[%c0_5, %c0_6] : memref<1x32xf32, #tpu.memory_space<vmem>>, vector<1x32xf32>
    %18 = vector.broadcast %17 : vector<1x32xf32> to vector<16x32xf32>
    %19 = arith.mulf %16, %18 : vector<16x32xf32>
    %c0_7 = arith.constant 0 : index
    %c0_8 = arith.constant 0 : index
    %20 = vector.load %arg3[%c0_7, %c0_8] : memref<1x32xf32, #tpu.memory_space<vmem>>, vector<1x32xf32>
    %21 = vector.broadcast %20 : vector<1x32xf32> to vector<16x32xf32>
    %22 = arith.addf %19, %21 : vector<16x32xf32>
    %23 = arith.truncf %22 : vector<16x32xf32> to vector<16x32xbf16>
    %c0_9 = arith.constant 0 : index
    %c0_10 = arith.constant 0 : index
    %24 = vector.load %arg4[%c0_9, %c0_10] : memref<32x96xbf16, #tpu.memory_space<vmem>>, vector<32x96xbf16>
    %cst_11 = arith.constant dense<0.000000e+00> : vector<16x96xf32>
    %25 = tpu.matmul %23, %24, %cst_11 {dimension_numbers = #tpu.dot_dimension_numbers<[1], [0], [0], [1], [0, 0, 1, 1], [], []>} : vector<16x32xbf16>, vector<32x96xbf16>, vector<16x96xf32> -> vector<16x96xf32>
    %c0_12 = arith.constant 0 : index
    %c0_13 = arith.constant 0 : index
    %26 = vector.load %arg5[%c0_12, %c0_13] : memref<1x96xf32, #tpu.memory_space<vmem>>, vector<1x96xf32>
    %27 = vector.broadcast %26 : vector<1x96xf32> to vector<16x96xf32>
    %28 = arith.addf %25, %27 : vector<16x96xf32>
    %29 = vector.extract_strided_slice %28 {offsets = [0, 0], sizes = [16, 32], strides = [1, 1]} : vector<16x96xf32> to vector<16x32xf32>
    %c0_14 = arith.constant 0 : index
    %c0_15 = arith.constant 0 : index
    %30 = vector.load %arg6[%c0_14, %c0_15] : memref<16x32xf32, #tpu.memory_space<vmem>>, vector<16x32xf32>
    tpu.vector_store %arg6[%c0_14, %c0_15], %29 {strides = array<i32>} : memref<16x32xf32, #tpu.memory_space<vmem>>, vector<16x32xf32>,
    %31 = vector.extract_strided_slice %28 {offsets = [0, 32], sizes = [16, 32], strides = [1, 1]} : vector<16x96xf32> to vector<16x32xf32>
    %c0_16 = arith.constant 0 : index
    %c0_17 = arith.constant 0 : index
    %32 = vector.load %arg7[%c0_16, %c0_17] : memref<16x32xf32, #tpu.memory_space<vmem>>, vector<16x32xf32>
    tpu.vector_store %arg7[%c0_16, %c0_17], %31 {strides = array<i32>} : memref<16x32xf32, #tpu.memory_space<vmem>>, vector<16x32xf32>,
    %33 = vector.extract_strided_slice %28 {offsets = [0, 64], sizes = [16, 32], strides = [1, 1]} : vector<16x96xf32> to vector<16x32xf32>
    %c0_18 = arith.constant 0 : index
    %c0_19 = arith.constant 0 : index
    %34 = vector.load %arg8[%c0_18, %c0_19] : memref<16x32xf32, #tpu.memory_space<vmem>>, vector<16x32xf32>
    tpu.vector_store %arg8[%c0_18, %c0_19], %33 {strides = array<i32>} : memref<16x32xf32, #tpu.memory_space<vmem>>, vector<16x32xf32>,
    return
  }
  func.func @transform_0(%arg0: i32) -> (i32, i32) {
    %c0_i32 = arith.constant 0 : i32
    %c0_i32_0 = arith.constant 0 : i32
    return %arg0, %c0_i32 : i32, i32
  }
  func.func @transform_1(%arg0: i32) -> (i32, i32) {
    %c0_i32 = arith.constant 0 : i32
    %c0_i32_0 = arith.constant 0 : i32
    %c0_i32_1 = arith.constant 0 : i32
    return %c0_i32, %c0_i32_0 : i32, i32
  }
  func.func @transform_2(%arg0: i32) -> (i32, i32) {
    %c0_i32 = arith.constant 0 : i32
    %c0_i32_0 = arith.constant 0 : i32
    %c0_i32_1 = arith.constant 0 : i32
    return %c0_i32, %c0_i32_0 : i32, i32
  }
  func.func @transform_3(%arg0: i32) -> (i32, i32) {
    %c0_i32 = arith.constant 0 : i32
    %c0_i32_0 = arith.constant 0 : i32
    %c0_i32_1 = arith.constant 0 : i32
    return %c0_i32, %c0_i32_0 : i32, i32
  }
  func.func @transform_4(%arg0: i32) -> (i32, i32) {
    %c0_i32 = arith.constant 0 : i32
    %c0_i32_0 = arith.constant 0 : i32
    %c0_i32_1 = arith.constant 0 : i32
    return %c0_i32, %c0_i32_0 : i32, i32
  }
  func.func @transform_5(%arg0: i32) -> (i32, i32) {
    %c0_i32 = arith.constant 0 : i32
    %c0_i32_0 = arith.constant 0 : i32
    return %arg0, %c0_i32 : i32, i32
  }
  func.func @transform_6(%arg0: i32) -> (i32, i32) {
    %c0_i32 = arith.constant 0 : i32
    %c0_i32_0 = arith.constant 0 : i32
    return %arg0, %c0_i32 : i32, i32
  }
  func.func @transform_7(%arg0: i32) -> (i32, i32) {
    %c0_i32 = arith.constant 0 : i32
    %c0_i32_0 = arith.constant 0 : i32
    return %arg0, %c0_i32 : i32, i32
  }
}

module attributes {stable_mosaic.version = 11 : i64} {
  func.func @_proj_res_kernel(%arg0: i32, %arg1: memref<16x32xf32, #tpu.memory_space<vmem>>, %arg2: memref<32x32xbf16, #tpu.memory_space<vmem>>, %arg3: memref<1x32xf32, #tpu.memory_space<vmem>>, %arg4: memref<16x32xf32, #tpu.memory_space<vmem>>, %arg5: memref<16x32xf32, #tpu.memory_space<vmem>>) attributes {dimension_semantics = [#tpu.dimension_semantics<parallel>], iteration_bounds = array<i64: 1>, scalar_prefetch = 0 : i64, scratch_operands = 0 : i64, tpu.core_type = #tpu.core_type<tc>, window_params = [{transform_indices = @transform_0, window_bounds = array<i64: 16, 32>}, {pipeline_mode = #tpu.pipeline_mode<synchronous>, transform_indices = @transform_1, window_bounds = array<i64: 32, 32>}, {pipeline_mode = #tpu.pipeline_mode<synchronous>, transform_indices = @transform_2, window_bounds = array<i64: 1, 32>}, {transform_indices = @transform_3, window_bounds = array<i64: 16, 32>}, {transform_indices = @transform_4, window_bounds = array<i64: 16, 32>}]} {
    %c0 = arith.constant 0 : index
    %c0_0 = arith.constant 0 : index
    %0 = vector.load %arg1[%c0, %c0_0] : memref<16x32xf32, #tpu.memory_space<vmem>>, vector<16x32xf32>
    %1 = arith.truncf %0 : vector<16x32xf32> to vector<16x32xbf16>
    %c0_1 = arith.constant 0 : index
    %c0_2 = arith.constant 0 : index
    %2 = vector.load %arg2[%c0_1, %c0_2] : memref<32x32xbf16, #tpu.memory_space<vmem>>, vector<32x32xbf16>
    %cst = arith.constant dense<0.000000e+00> : vector<16x32xf32>
    %3 = tpu.matmul %1, %2, %cst {dimension_numbers = #tpu.dot_dimension_numbers<[1], [0], [0], [1], [0, 0, 1, 1], [], []>} : vector<16x32xbf16>, vector<32x32xbf16>, vector<16x32xf32> -> vector<16x32xf32>
    %c0_3 = arith.constant 0 : index
    %c0_4 = arith.constant 0 : index
    %4 = vector.load %arg3[%c0_3, %c0_4] : memref<1x32xf32, #tpu.memory_space<vmem>>, vector<1x32xf32>
    %5 = vector.broadcast %4 : vector<1x32xf32> to vector<16x32xf32>
    %6 = arith.addf %3, %5 : vector<16x32xf32>
    %c0_5 = arith.constant 0 : index
    %c0_6 = arith.constant 0 : index
    %7 = vector.load %arg4[%c0_5, %c0_6] : memref<16x32xf32, #tpu.memory_space<vmem>>, vector<16x32xf32>
    %8 = arith.addf %6, %7 : vector<16x32xf32>
    %c0_7 = arith.constant 0 : index
    %c0_8 = arith.constant 0 : index
    %9 = vector.load %arg5[%c0_7, %c0_8] : memref<16x32xf32, #tpu.memory_space<vmem>>, vector<16x32xf32>
    tpu.vector_store %arg5[%c0_7, %c0_8], %8 {strides = array<i32>} : memref<16x32xf32, #tpu.memory_space<vmem>>, vector<16x32xf32>,
    return
  }
  func.func @transform_0(%arg0: i32) -> (i32, i32) {
    %c0_i32 = arith.constant 0 : i32
    %c0_i32_0 = arith.constant 0 : i32
    return %arg0, %c0_i32 : i32, i32
  }
  func.func @transform_1(%arg0: i32) -> (i32, i32) {
    %c0_i32 = arith.constant 0 : i32
    %c0_i32_0 = arith.constant 0 : i32
    %c0_i32_1 = arith.constant 0 : i32
    return %c0_i32, %c0_i32_0 : i32, i32
  }
  func.func @transform_2(%arg0: i32) -> (i32, i32) {
    %c0_i32 = arith.constant 0 : i32
    %c0_i32_0 = arith.constant 0 : i32
    %c0_i32_1 = arith.constant 0 : i32
    return %c0_i32, %c0_i32_0 : i32, i32
  }
  func.func @transform_3(%arg0: i32) -> (i32, i32) {
    %c0_i32 = arith.constant 0 : i32
    %c0_i32_0 = arith.constant 0 : i32
    return %arg0, %c0_i32 : i32, i32
  }
  func.func @transform_4(%arg0: i32) -> (i32, i32) {
    %c0_i32 = arith.constant 0 : i32
    %c0_i32_0 = arith.constant 0 : i32
    return %arg0, %c0_i32 : i32, i32
  }
}

module attributes {stable_mosaic.version = 11 : i64} {
  func.func @_ln_ff1_kernel(%arg0: i32, %arg1: memref<16x32xf32, #tpu.memory_space<vmem>>, %arg2: memref<1x32xf32, #tpu.memory_space<vmem>>, %arg3: memref<1x32xf32, #tpu.memory_space<vmem>>, %arg4: memref<32x128xbf16, #tpu.memory_space<vmem>>, %arg5: memref<1x128xf32, #tpu.memory_space<vmem>>, %arg6: memref<16x128xbf16, #tpu.memory_space<vmem>>) attributes {dimension_semantics = [#tpu.dimension_semantics<parallel>], iteration_bounds = array<i64: 1>, scalar_prefetch = 0 : i64, scratch_operands = 0 : i64, tpu.core_type = #tpu.core_type<tc>, window_params = [{transform_indices = @transform_0, window_bounds = array<i64: 16, 32>}, {pipeline_mode = #tpu.pipeline_mode<synchronous>, transform_indices = @transform_1, window_bounds = array<i64: 1, 32>}, {pipeline_mode = #tpu.pipeline_mode<synchronous>, transform_indices = @transform_2, window_bounds = array<i64: 1, 32>}, {pipeline_mode = #tpu.pipeline_mode<synchronous>, transform_indices = @transform_3, window_bounds = array<i64: 32, 128>}, {pipeline_mode = #tpu.pipeline_mode<synchronous>, transform_indices = @transform_4, window_bounds = array<i64: 1, 128>}, {transform_indices = @transform_5, window_bounds = array<i64: 16, 128>}]} {
    %c0 = arith.constant 0 : index
    %c0_0 = arith.constant 0 : index
    %0 = vector.load %arg1[%c0, %c0_0] : memref<16x32xf32, #tpu.memory_space<vmem>>, vector<16x32xf32>
    %cst = arith.constant dense<0.000000e+00> : vector<16xf32>
    %1 = vector.multi_reduction <add>, %0, %cst [1] : vector<16x32xf32> to vector<16xf32>
    %2 = vector.shape_cast %1 : vector<16xf32> to vector<16x1xf32>
    %cst_1 = arith.constant 3.200000e+01 : f32
    %3 = vector.broadcast %cst_1 : f32 to vector<16x1xf32>
    %4 = arith.divf %2, %3 : vector<16x1xf32>
    %5 = vector.broadcast %4 : vector<16x1xf32> to vector<16x32xf32>
    %6 = arith.subf %0, %5 : vector<16x32xf32>
    %7 = arith.mulf %6, %6 : vector<16x32xf32>
    %cst_2 = arith.constant dense<0.000000e+00> : vector<16xf32>
    %8 = vector.multi_reduction <add>, %7, %cst_2 [1] : vector<16x32xf32> to vector<16xf32>
    %9 = vector.shape_cast %8 : vector<16xf32> to vector<16x1xf32>
    %cst_3 = arith.constant 3.200000e+01 : f32
    %10 = vector.broadcast %cst_3 : f32 to vector<16x1xf32>
    %11 = arith.divf %9, %10 : vector<16x1xf32>
    %cst_4 = arith.constant 9.99999974E-6 : f32
    %12 = vector.broadcast %cst_4 : f32 to vector<16x1xf32>
    %13 = arith.addf %11, %12 : vector<16x1xf32>
    %14 = math.rsqrt %13 : vector<16x1xf32>
    %15 = vector.broadcast %14 : vector<16x1xf32> to vector<16x32xf32>
    %16 = arith.mulf %6, %15 : vector<16x32xf32>
    %c0_5 = arith.constant 0 : index
    %c0_6 = arith.constant 0 : index
    %17 = vector.load %arg2[%c0_5, %c0_6] : memref<1x32xf32, #tpu.memory_space<vmem>>, vector<1x32xf32>
    %18 = vector.broadcast %17 : vector<1x32xf32> to vector<16x32xf32>
    %19 = arith.mulf %16, %18 : vector<16x32xf32>
    %c0_7 = arith.constant 0 : index
    %c0_8 = arith.constant 0 : index
    %20 = vector.load %arg3[%c0_7, %c0_8] : memref<1x32xf32, #tpu.memory_space<vmem>>, vector<1x32xf32>
    %21 = vector.broadcast %20 : vector<1x32xf32> to vector<16x32xf32>
    %22 = arith.addf %19, %21 : vector<16x32xf32>
    %23 = arith.truncf %22 : vector<16x32xf32> to vector<16x32xbf16>
    %c0_9 = arith.constant 0 : index
    %c0_10 = arith.constant 0 : index
    %24 = vector.load %arg4[%c0_9, %c0_10] : memref<32x128xbf16, #tpu.memory_space<vmem>>, vector<32x128xbf16>
    %cst_11 = arith.constant dense<0.000000e+00> : vector<16x128xf32>
    %25 = tpu.matmul %23, %24, %cst_11 {dimension_numbers = #tpu.dot_dimension_numbers<[1], [0], [0], [1], [0, 0, 1, 1], [], []>} : vector<16x32xbf16>, vector<32x128xbf16>, vector<16x128xf32> -> vector<16x128xf32>
    %c0_12 = arith.constant 0 : index
    %c0_13 = arith.constant 0 : index
    %26 = vector.load %arg5[%c0_12, %c0_13] : memref<1x128xf32, #tpu.memory_space<vmem>>, vector<1x128xf32>
    %27 = vector.broadcast %26 : vector<1x128xf32> to vector<16x128xf32>
    %28 = arith.addf %25, %27 : vector<16x128xf32>
    %cst_14 = arith.constant 5.000000e-01 : f32
    %29 = vector.broadcast %cst_14 : f32 to vector<16x128xf32>
    %30 = arith.mulf %29, %28 : vector<16x128xf32>
    %cst_15 = arith.constant 0.707106769 : f32
    %31 = vector.broadcast %cst_15 : f32 to vector<16x128xf32>
    %32 = arith.mulf %28, %31 : vector<16x128xf32>
    %cst_16 = arith.constant 0.000000e+00 : f32
    %33 = vector.broadcast %cst_16 : f32 to vector<16x128xf32>
    %34 = arith.cmpf oge, %32, %33 : vector<16x128xf32>
    %cst_17 = arith.constant 1.000000e+00 : f32
    %cst_18 = arith.constant -1.000000e+00 : f32
    %35 = vector.broadcast %cst_17 : f32 to vector<16x128xf32>
    %36 = vector.broadcast %cst_18 : f32 to vector<16x128xf32>
    %37 = arith.select %34, %35, %36 : vector<16x128xi1>, vector<16x128xf32>
    %38 = math.absf %32 : vector<16x128xf32>
    %cst_19 = arith.constant 0.327591091 : f32
    %39 = vector.broadcast %cst_19 : f32 to vector<16x128xf32>
    %40 = arith.mulf %39, %38 : vector<16x128xf32>
    %cst_20 = arith.constant 1.000000e+00 : f32
    %41 = vector.broadcast %cst_20 : f32 to vector<16x128xf32>
    %42 = arith.addf %41, %40 : vector<16x128xf32>
    %cst_21 = arith.constant 1.000000e+00 : f32
    %43 = vector.broadcast %cst_21 : f32 to vector<16x128xf32>
    %44 = arith.divf %43, %42 : vector<16x128xf32>
    %cst_22 = arith.constant 1.06140542 : f32
    %45 = vector.broadcast %cst_22 : f32 to vector<16x128xf32>
    %46 = arith.mulf %45, %44 : vector<16x128xf32>
    %cst_23 = arith.constant -1.45315206 : f32
    %47 = vector.broadcast %cst_23 : f32 to vector<16x128xf32>
    %48 = arith.addf %46, %47 : vector<16x128xf32>
    %49 = arith.mulf %48, %44 : vector<16x128xf32>
    %cst_24 = arith.constant 1.42141378 : f32
    %50 = vector.broadcast %cst_24 : f32 to vector<16x128xf32>
    %51 = arith.addf %49, %50 : vector<16x128xf32>
    %52 = arith.mulf %51, %44 : vector<16x128xf32>
    %cst_25 = arith.constant -0.284496725 : f32
    %53 = vector.broadcast %cst_25 : f32 to vector<16x128xf32>
    %54 = arith.addf %52, %53 : vector<16x128xf32>
    %55 = arith.mulf %54, %44 : vector<16x128xf32>
    %cst_26 = arith.constant 0.254829586 : f32
    %56 = vector.broadcast %cst_26 : f32 to vector<16x128xf32>
    %57 = arith.addf %55, %56 : vector<16x128xf32>
    %58 = arith.mulf %57, %44 : vector<16x128xf32>
    %cst_27 = arith.constant 0.000000e+00 : f32
    %59 = vector.broadcast %cst_27 : f32 to vector<16x128xf32>
    %60 = arith.subf %59, %38 : vector<16x128xf32>
    %61 = arith.mulf %60, %38 : vector<16x128xf32>
    %62 = math.exp %61 : vector<16x128xf32>
    %63 = arith.mulf %58, %62 : vector<16x128xf32>
    %cst_28 = arith.constant 1.000000e+00 : f32
    %64 = vector.broadcast %cst_28 : f32 to vector<16x128xf32>
    %65 = arith.subf %64, %63 : vector<16x128xf32>
    %66 = arith.mulf %37, %65 : vector<16x128xf32>
    %cst_29 = arith.constant 1.000000e+00 : f32
    %67 = vector.broadcast %cst_29 : f32 to vector<16x128xf32>
    %68 = arith.addf %67, %66 : vector<16x128xf32>
    %69 = arith.mulf %30, %68 : vector<16x128xf32>
    %70 = arith.truncf %69 : vector<16x128xf32> to vector<16x128xbf16>
    %c0_30 = arith.constant 0 : index
    %c0_31 = arith.constant 0 : index
    %71 = vector.load %arg6[%c0_30, %c0_31] : memref<16x128xbf16, #tpu.memory_space<vmem>>, vector<16x128xbf16>
    tpu.vector_store %arg6[%c0_30, %c0_31], %70 {strides = array<i32>} : memref<16x128xbf16, #tpu.memory_space<vmem>>, vector<16x128xbf16>,
    return
  }
  func.func @transform_0(%arg0: i32) -> (i32, i32) {
    %c0_i32 = arith.constant 0 : i32
    %c0_i32_0 = arith.constant 0 : i32
    return %arg0, %c0_i32 : i32, i32
  }
  func.func @transform_1(%arg0: i32) -> (i32, i32) {
    %c0_i32 = arith.constant 0 : i32
    %c0_i32_0 = arith.constant 0 : i32
    %c0_i32_1 = arith.constant 0 : i32
    return %c0_i32, %c0_i32_0 : i32, i32
  }
  func.func @transform_2(%arg0: i32) -> (i32, i32) {
    %c0_i32 = arith.constant 0 : i32
    %c0_i32_0 = arith.constant 0 : i32
    %c0_i32_1 = arith.constant 0 : i32
    return %c0_i32, %c0_i32_0 : i32, i32
  }
  func.func @transform_3(%arg0: i32) -> (i32, i32) {
    %c0_i32 = arith.constant 0 : i32
    %c0_i32_0 = arith.constant 0 : i32
    %c0_i32_1 = arith.constant 0 : i32
    return %c0_i32, %c0_i32_0 : i32, i32
  }
  func.func @transform_4(%arg0: i32) -> (i32, i32) {
    %c0_i32 = arith.constant 0 : i32
    %c0_i32_0 = arith.constant 0 : i32
    %c0_i32_1 = arith.constant 0 : i32
    return %c0_i32, %c0_i32_0 : i32, i32
  }
  func.func @transform_5(%arg0: i32) -> (i32, i32) {
    %c0_i32 = arith.constant 0 : i32
    %c0_i32_0 = arith.constant 0 : i32
    return %arg0, %c0_i32 : i32, i32
  }
}

module attributes {stable_mosaic.version = 11 : i64} {
  func.func @_attention_kernel(%arg0: i32, %arg1: i32, %arg2: memref<1x8x32xf32, #tpu.memory_space<vmem>>, %arg3: memref<1x8x32xf32, #tpu.memory_space<vmem>>, %arg4: memref<1x8x32xf32, #tpu.memory_space<vmem>>, %arg5: memref<1x8x32xf32, #tpu.memory_space<vmem>>, %arg6: memref<1x4x8x8xf32, #tpu.memory_space<vmem>>) attributes {dimension_semantics = [#tpu.dimension_semantics<parallel>, #tpu.dimension_semantics<parallel>], iteration_bounds = array<i64: 2, 1>, scalar_prefetch = 0 : i64, scratch_operands = 0 : i64, tpu.core_type = #tpu.core_type<tc>, window_params = [{transform_indices = @transform_0, window_bounds = array<i64: 1, 8, 32>}, {transform_indices = @transform_1, window_bounds = array<i64: 1, 8, 32>}, {transform_indices = @transform_2, window_bounds = array<i64: 1, 8, 32>}, {transform_indices = @transform_3, window_bounds = array<i64: 1, 8, 32>}, {transform_indices = @transform_4, window_bounds = array<i64: 1, 4, 8, 8>}]} {
    %c0 = arith.constant 0 : index
    %c0_0 = arith.constant 0 : index
    %c0_1 = arith.constant 0 : index
    %0 = vector.load %arg2[%c0, %c0_0, %c0_1] : memref<1x8x32xf32, #tpu.memory_space<vmem>>, vector<1x8x32xf32>
    %1 = vector.shape_cast %0 : vector<1x8x32xf32> to vector<8x32xf32>
    %cst = arith.constant 0.353553385 : f32
    %2 = vector.broadcast %cst : f32 to vector<8x32xf32>
    %3 = arith.mulf %1, %2 : vector<8x32xf32>
    %4 = arith.truncf %3 : vector<8x32xf32> to vector<8x32xbf16>
    %c0_2 = arith.constant 0 : index
    %c0_3 = arith.constant 0 : index
    %c0_4 = arith.constant 0 : index
    %5 = vector.load %arg3[%c0_2, %c0_3, %c0_4] : memref<1x8x32xf32, #tpu.memory_space<vmem>>, vector<1x8x32xf32>
    %6 = vector.shape_cast %5 : vector<1x8x32xf32> to vector<8x32xf32>
    %7 = arith.truncf %6 : vector<8x32xf32> to vector<8x32xbf16>
    %c0_5 = arith.constant 0 : index
    %c0_6 = arith.constant 0 : index
    %c0_7 = arith.constant 0 : index
    %8 = vector.load %arg4[%c0_5, %c0_6, %c0_7] : memref<1x8x32xf32, #tpu.memory_space<vmem>>, vector<1x8x32xf32>
    %9 = vector.shape_cast %8 : vector<1x8x32xf32> to vector<8x32xf32>
    %10 = arith.truncf %9 : vector<8x32xf32> to vector<8x32xbf16>
    %11 = vector.extract_strided_slice %4 {offsets = [0, 0], sizes = [8, 8], strides = [1, 1]} : vector<8x32xbf16> to vector<8x8xbf16>
    %12 = vector.extract_strided_slice %7 {offsets = [0, 0], sizes = [8, 8], strides = [1, 1]} : vector<8x32xbf16> to vector<8x8xbf16>
    "tpu.trace_start"() <{level = 10 : i32, message = "qd,kd->qk"}> : () -> ()
    %cst_8 = arith.constant dense<0.000000e+00> : vector<8x8xf32>
    %13 = tpu.matmul %11, %12, %cst_8 {dimension_numbers = #tpu.dot_dimension_numbers<[1], [1], [0], [0], [0, 0, 1, 0], [], []>} : vector<8x8xbf16>, vector<8x8xbf16>, vector<8x8xf32> -> vector<8x8xf32>
    "tpu.trace_stop"() : () -> ()
    %cst_9 = arith.constant dense<0xFF800000> : vector<8xf32>
    %14 = vector.multi_reduction <maximumf>, %13, %cst_9 [1] : vector<8x8xf32> to vector<8xf32>
    %15 = vector.shape_cast %14 : vector<8xf32> to vector<8x1xf32>
    %16 = vector.broadcast %15 : vector<8x1xf32> to vector<8x8xf32>
    %17 = arith.subf %13, %16 : vector<8x8xf32>
    %18 = math.exp %17 : vector<8x8xf32>
    %cst_10 = arith.constant dense<0.000000e+00> : vector<8xf32>
    %19 = vector.multi_reduction <add>, %18, %cst_10 [1] : vector<8x8xf32> to vector<8xf32>
    %20 = vector.shape_cast %19 : vector<8xf32> to vector<8x1xf32>
    %21 = vector.broadcast %20 : vector<8x1xf32> to vector<8x8xf32>
    %22 = arith.divf %18, %21 : vector<8x8xf32>
    %c0_11 = arith.constant 0 : index
    %c0_12 = arith.constant 0 : index
    %c0_13 = arith.constant 0 : index
    %c0_14 = arith.constant 0 : index
    %23 = vector.load %arg6[%c0_11, %c0_12, %c0_13, %c0_14] : memref<1x4x8x8xf32, #tpu.memory_space<vmem>>, vector<1x1x8x8xf32>
    %24 = vector.shape_cast %23 : vector<1x1x8x8xf32> to vector<8x8xf32>
    %25 = vector.shape_cast %22 : vector<8x8xf32> to vector<1x1x8x8xf32>
    tpu.vector_store %arg6[%c0_11, %c0_12, %c0_13, %c0_14], %25 {strides = array<i32>} : memref<1x4x8x8xf32, #tpu.memory_space<vmem>>, vector<1x1x8x8xf32>,
    %26 = arith.truncf %22 : vector<8x8xf32> to vector<8x8xbf16>
    %27 = vector.extract_strided_slice %10 {offsets = [0, 0], sizes = [8, 8], strides = [1, 1]} : vector<8x32xbf16> to vector<8x8xbf16>
    %cst_15 = arith.constant dense<0.000000e+00> : vector<8x8xf32>
    %28 = tpu.matmul %26, %27, %cst_15 {dimension_numbers = #tpu.dot_dimension_numbers<[1], [0], [0], [1], [0, 0, 1, 1], [], []>} : vector<8x8xbf16>, vector<8x8xbf16>, vector<8x8xf32> -> vector<8x8xf32>
    %29 = vector.extract_strided_slice %4 {offsets = [0, 8], sizes = [8, 8], strides = [1, 1]} : vector<8x32xbf16> to vector<8x8xbf16>
    %30 = vector.extract_strided_slice %7 {offsets = [0, 8], sizes = [8, 8], strides = [1, 1]} : vector<8x32xbf16> to vector<8x8xbf16>
    "tpu.trace_start"() <{level = 10 : i32, message = "qd,kd->qk"}> : () -> ()
    %cst_16 = arith.constant dense<0.000000e+00> : vector<8x8xf32>
    %31 = tpu.matmul %29, %30, %cst_16 {dimension_numbers = #tpu.dot_dimension_numbers<[1], [1], [0], [0], [0, 0, 1, 0], [], []>} : vector<8x8xbf16>, vector<8x8xbf16>, vector<8x8xf32> -> vector<8x8xf32>
    "tpu.trace_stop"() : () -> ()
    %cst_17 = arith.constant dense<0xFF800000> : vector<8xf32>
    %32 = vector.multi_reduction <maximumf>, %31, %cst_17 [1] : vector<8x8xf32> to vector<8xf32>
    %33 = vector.shape_cast %32 : vector<8xf32> to vector<8x1xf32>
    %34 = vector.broadcast %33 : vector<8x1xf32> to vector<8x8xf32>
    %35 = arith.subf %31, %34 : vector<8x8xf32>
    %36 = math.exp %35 : vector<8x8xf32>
    %cst_18 = arith.constant dense<0.000000e+00> : vector<8xf32>
    %37 = vector.multi_reduction <add>, %36, %cst_18 [1] : vector<8x8xf32> to vector<8xf32>
    %38 = vector.shape_cast %37 : vector<8xf32> to vector<8x1xf32>
    %39 = vector.broadcast %38 : vector<8x1xf32> to vector<8x8xf32>
    %40 = arith.divf %36, %39 : vector<8x8xf32>
    %c0_19 = arith.constant 0 : index
    %c1 = arith.constant 1 : index
    %c0_20 = arith.constant 0 : index
    %c0_21 = arith.constant 0 : index
    %41 = vector.load %arg6[%c0_19, %c1, %c0_20, %c0_21] : memref<1x4x8x8xf32, #tpu.memory_space<vmem>>, vector<1x1x8x8xf32>
    %42 = vector.shape_cast %41 : vector<1x1x8x8xf32> to vector<8x8xf32>
    %43 = vector.shape_cast %40 : vector<8x8xf32> to vector<1x1x8x8xf32>
    tpu.vector_store %arg6[%c0_19, %c1, %c0_20, %c0_21], %43 {strides = array<i32>} : memref<1x4x8x8xf32, #tpu.memory_space<vmem>>, vector<1x1x8x8xf32>,
    %44 = arith.truncf %40 : vector<8x8xf32> to vector<8x8xbf16>
    %45 = vector.extract_strided_slice %10 {offsets = [0, 8], sizes = [8, 8], strides = [1, 1]} : vector<8x32xbf16> to vector<8x8xbf16>
    %cst_22 = arith.constant dense<0.000000e+00> : vector<8x8xf32>
    %46 = tpu.matmul %44, %45, %cst_22 {dimension_numbers = #tpu.dot_dimension_numbers<[1], [0], [0], [1], [0, 0, 1, 1], [], []>} : vector<8x8xbf16>, vector<8x8xbf16>, vector<8x8xf32> -> vector<8x8xf32>
    %47 = vector.extract_strided_slice %4 {offsets = [0, 16], sizes = [8, 8], strides = [1, 1]} : vector<8x32xbf16> to vector<8x8xbf16>
    %48 = vector.extract_strided_slice %7 {offsets = [0, 16], sizes = [8, 8], strides = [1, 1]} : vector<8x32xbf16> to vector<8x8xbf16>
    "tpu.trace_start"() <{level = 10 : i32, message = "qd,kd->qk"}> : () -> ()
    %cst_23 = arith.constant dense<0.000000e+00> : vector<8x8xf32>
    %49 = tpu.matmul %47, %48, %cst_23 {dimension_numbers = #tpu.dot_dimension_numbers<[1], [1], [0], [0], [0, 0, 1, 0], [], []>} : vector<8x8xbf16>, vector<8x8xbf16>, vector<8x8xf32> -> vector<8x8xf32>
    "tpu.trace_stop"() : () -> ()
    %cst_24 = arith.constant dense<0xFF800000> : vector<8xf32>
    %50 = vector.multi_reduction <maximumf>, %49, %cst_24 [1] : vector<8x8xf32> to vector<8xf32>
    %51 = vector.shape_cast %50 : vector<8xf32> to vector<8x1xf32>
    %52 = vector.broadcast %51 : vector<8x1xf32> to vector<8x8xf32>
    %53 = arith.subf %49, %52 : vector<8x8xf32>
    %54 = math.exp %53 : vector<8x8xf32>
    %cst_25 = arith.constant dense<0.000000e+00> : vector<8xf32>
    %55 = vector.multi_reduction <add>, %54, %cst_25 [1] : vector<8x8xf32> to vector<8xf32>
    %56 = vector.shape_cast %55 : vector<8xf32> to vector<8x1xf32>
    %57 = vector.broadcast %56 : vector<8x1xf32> to vector<8x8xf32>
    %58 = arith.divf %54, %57 : vector<8x8xf32>
    %c0_26 = arith.constant 0 : index
    %c2 = arith.constant 2 : index
    %c0_27 = arith.constant 0 : index
    %c0_28 = arith.constant 0 : index
    %59 = vector.load %arg6[%c0_26, %c2, %c0_27, %c0_28] : memref<1x4x8x8xf32, #tpu.memory_space<vmem>>, vector<1x1x8x8xf32>
    %60 = vector.shape_cast %59 : vector<1x1x8x8xf32> to vector<8x8xf32>
    %61 = vector.shape_cast %58 : vector<8x8xf32> to vector<1x1x8x8xf32>
    tpu.vector_store %arg6[%c0_26, %c2, %c0_27, %c0_28], %61 {strides = array<i32>} : memref<1x4x8x8xf32, #tpu.memory_space<vmem>>, vector<1x1x8x8xf32>,
    %62 = arith.truncf %58 : vector<8x8xf32> to vector<8x8xbf16>
    %63 = vector.extract_strided_slice %10 {offsets = [0, 16], sizes = [8, 8], strides = [1, 1]} : vector<8x32xbf16> to vector<8x8xbf16>
    %cst_29 = arith.constant dense<0.000000e+00> : vector<8x8xf32>
    %64 = tpu.matmul %62, %63, %cst_29 {dimension_numbers = #tpu.dot_dimension_numbers<[1], [0], [0], [1], [0, 0, 1, 1], [], []>} : vector<8x8xbf16>, vector<8x8xbf16>, vector<8x8xf32> -> vector<8x8xf32>
    %65 = vector.extract_strided_slice %4 {offsets = [0, 24], sizes = [8, 8], strides = [1, 1]} : vector<8x32xbf16> to vector<8x8xbf16>
    %66 = vector.extract_strided_slice %7 {offsets = [0, 24], sizes = [8, 8], strides = [1, 1]} : vector<8x32xbf16> to vector<8x8xbf16>
    "tpu.trace_start"() <{level = 10 : i32, message = "qd,kd->qk"}> : () -> ()
    %cst_30 = arith.constant dense<0.000000e+00> : vector<8x8xf32>
    %67 = tpu.matmul %65, %66, %cst_30 {dimension_numbers = #tpu.dot_dimension_numbers<[1], [1], [0], [0], [0, 0, 1, 0], [], []>} : vector<8x8xbf16>, vector<8x8xbf16>, vector<8x8xf32> -> vector<8x8xf32>
    "tpu.trace_stop"() : () -> ()
    %cst_31 = arith.constant dense<0xFF800000> : vector<8xf32>
    %68 = vector.multi_reduction <maximumf>, %67, %cst_31 [1] : vector<8x8xf32> to vector<8xf32>
    %69 = vector.shape_cast %68 : vector<8xf32> to vector<8x1xf32>
    %70 = vector.broadcast %69 : vector<8x1xf32> to vector<8x8xf32>
    %71 = arith.subf %67, %70 : vector<8x8xf32>
    %72 = math.exp %71 : vector<8x8xf32>
    %cst_32 = arith.constant dense<0.000000e+00> : vector<8xf32>
    %73 = vector.multi_reduction <add>, %72, %cst_32 [1] : vector<8x8xf32> to vector<8xf32>
    %74 = vector.shape_cast %73 : vector<8xf32> to vector<8x1xf32>
    %75 = vector.broadcast %74 : vector<8x1xf32> to vector<8x8xf32>
    %76 = arith.divf %72, %75 : vector<8x8xf32>
    %c0_33 = arith.constant 0 : index
    %c3 = arith.constant 3 : index
    %c0_34 = arith.constant 0 : index
    %c0_35 = arith.constant 0 : index
    %77 = vector.load %arg6[%c0_33, %c3, %c0_34, %c0_35] : memref<1x4x8x8xf32, #tpu.memory_space<vmem>>, vector<1x1x8x8xf32>
    %78 = vector.shape_cast %77 : vector<1x1x8x8xf32> to vector<8x8xf32>
    %79 = vector.shape_cast %76 : vector<8x8xf32> to vector<1x1x8x8xf32>
    tpu.vector_store %arg6[%c0_33, %c3, %c0_34, %c0_35], %79 {strides = array<i32>} : memref<1x4x8x8xf32, #tpu.memory_space<vmem>>, vector<1x1x8x8xf32>,
    %80 = arith.truncf %76 : vector<8x8xf32> to vector<8x8xbf16>
    %81 = vector.extract_strided_slice %10 {offsets = [0, 24], sizes = [8, 8], strides = [1, 1]} : vector<8x32xbf16> to vector<8x8xbf16>
    %cst_36 = arith.constant dense<0.000000e+00> : vector<8x8xf32>
    %82 = tpu.matmul %80, %81, %cst_36 {dimension_numbers = #tpu.dot_dimension_numbers<[1], [0], [0], [1], [0, 0, 1, 1], [], []>} : vector<8x8xbf16>, vector<8x8xbf16>, vector<8x8xf32> -> vector<8x8xf32>
    %83 = tpu.concatenate %28, %46, %64, %82 in 1 : vector<8x8xf32>, vector<8x8xf32>, vector<8x8xf32>, vector<8x8xf32> -> vector<8x32xf32>
    %c0_37 = arith.constant 0 : index
    %c0_38 = arith.constant 0 : index
    %c0_39 = arith.constant 0 : index
    %84 = vector.load %arg5[%c0_37, %c0_38, %c0_39] : memref<1x8x32xf32, #tpu.memory_space<vmem>>, vector<1x8x32xf32>
    %85 = vector.shape_cast %84 : vector<1x8x32xf32> to vector<8x32xf32>
    %86 = vector.shape_cast %83 : vector<8x32xf32> to vector<1x8x32xf32>
    tpu.vector_store %arg5[%c0_37, %c0_38, %c0_39], %86 {strides = array<i32>} : memref<1x8x32xf32, #tpu.memory_space<vmem>>, vector<1x8x32xf32>,
    return
  }
  func.func @transform_0(%arg0: i32, %arg1: i32) -> (i32, i32, i32) {
    %c0_i32 = arith.constant 0 : i32
    %c0_i32_0 = arith.constant 0 : i32
    return %arg0, %arg1, %c0_i32 : i32, i32, i32
  }
  func.func @transform_1(%arg0: i32, %arg1: i32) -> (i32, i32, i32) {
    %c0_i32 = arith.constant 0 : i32
    %c0_i32_0 = arith.constant 0 : i32
    %c0_i32_1 = arith.constant 0 : i32
    return %arg0, %c0_i32, %c0_i32_0 : i32, i32, i32
  }
  func.func @transform_2(%arg0: i32, %arg1: i32) -> (i32, i32, i32) {
    %c0_i32 = arith.constant 0 : i32
    %c0_i32_0 = arith.constant 0 : i32
    %c0_i32_1 = arith.constant 0 : i32
    return %arg0, %c0_i32, %c0_i32_0 : i32, i32, i32
  }
  func.func @transform_3(%arg0: i32, %arg1: i32) -> (i32, i32, i32) {
    %c0_i32 = arith.constant 0 : i32
    %c0_i32_0 = arith.constant 0 : i32
    return %arg0, %arg1, %c0_i32 : i32, i32, i32
  }
  func.func @transform_4(%arg0: i32, %arg1: i32) -> (i32, i32, i32, i32) {
    %c0_i32 = arith.constant 0 : i32
    %c0_i32_0 = arith.constant 0 : i32
    %c0_i32_1 = arith.constant 0 : i32
    return %arg0, %c0_i32, %arg1, %c0_i32_0 : i32, i32, i32, i32
  }
}

module attributes {stable_mosaic.version = 11 : i64} {
  func.func @_proj_res_kernel(%arg0: i32, %arg1: memref<16x128xbf16, #tpu.memory_space<vmem>>, %arg2: memref<128x32xbf16, #tpu.memory_space<vmem>>, %arg3: memref<1x32xf32, #tpu.memory_space<vmem>>, %arg4: memref<16x32xf32, #tpu.memory_space<vmem>>, %arg5: memref<16x32xf32, #tpu.memory_space<vmem>>) attributes {dimension_semantics = [#tpu.dimension_semantics<parallel>], iteration_bounds = array<i64: 1>, scalar_prefetch = 0 : i64, scratch_operands = 0 : i64, tpu.core_type = #tpu.core_type<tc>, window_params = [{transform_indices = @transform_0, window_bounds = array<i64: 16, 128>}, {pipeline_mode = #tpu.pipeline_mode<synchronous>, transform_indices = @transform_1, window_bounds = array<i64: 128, 32>}, {pipeline_mode = #tpu.pipeline_mode<synchronous>, transform_indices = @transform_2, window_bounds = array<i64: 1, 32>}, {transform_indices = @transform_3, window_bounds = array<i64: 16, 32>}, {transform_indices = @transform_4, window_bounds = array<i64: 16, 32>}]} {
    %c0 = arith.constant 0 : index
    %c0_0 = arith.constant 0 : index
    %0 = vector.load %arg1[%c0, %c0_0] : memref<16x128xbf16, #tpu.memory_space<vmem>>, vector<16x128xbf16>
    %c0_1 = arith.constant 0 : index
    %c0_2 = arith.constant 0 : index
    %1 = vector.load %arg2[%c0_1, %c0_2] : memref<128x32xbf16, #tpu.memory_space<vmem>>, vector<128x32xbf16>
    %cst = arith.constant dense<0.000000e+00> : vector<16x32xf32>
    %2 = tpu.matmul %0, %1, %cst {dimension_numbers = #tpu.dot_dimension_numbers<[1], [0], [0], [1], [0, 0, 1, 1], [], []>} : vector<16x128xbf16>, vector<128x32xbf16>, vector<16x32xf32> -> vector<16x32xf32>
    %c0_3 = arith.constant 0 : index
    %c0_4 = arith.constant 0 : index
    %3 = vector.load %arg3[%c0_3, %c0_4] : memref<1x32xf32, #tpu.memory_space<vmem>>, vector<1x32xf32>
    %4 = vector.broadcast %3 : vector<1x32xf32> to vector<16x32xf32>
    %5 = arith.addf %2, %4 : vector<16x32xf32>
    %c0_5 = arith.constant 0 : index
    %c0_6 = arith.constant 0 : index
    %6 = vector.load %arg4[%c0_5, %c0_6] : memref<16x32xf32, #tpu.memory_space<vmem>>, vector<16x32xf32>
    %7 = arith.addf %5, %6 : vector<16x32xf32>
    %c0_7 = arith.constant 0 : index
    %c0_8 = arith.constant 0 : index
    %8 = vector.load %arg5[%c0_7, %c0_8] : memref<16x32xf32, #tpu.memory_space<vmem>>, vector<16x32xf32>
    tpu.vector_store %arg5[%c0_7, %c0_8], %7 {strides = array<i32>} : memref<16x32xf32, #tpu.memory_space<vmem>>, vector<16x32xf32>,
    return
  }
  func.func @transform_0(%arg0: i32) -> (i32, i32) {
    %c0_i32 = arith.constant 0 : i32
    %c0_i32_0 = arith.constant 0 : i32
    return %arg0, %c0_i32 : i32, i32
  }
  func.func @transform_1(%arg0: i32) -> (i32, i32) {
    %c0_i32 = arith.constant 0 : i32
    %c0_i32_0 = arith.constant 0 : i32
    %c0_i32_1 = arith.constant 0 : i32
    return %c0_i32, %c0_i32_0 : i32, i32
  }
  func.func @transform_2(%arg0: i32) -> (i32, i32) {
    %c0_i32 = arith.constant 0 : i32
    %c0_i32_0 = arith.constant 0 : i32
    %c0_i32_1 = arith.constant 0 : i32
    return %c0_i32, %c0_i32_0 : i32, i32
  }
  func.func @transform_3(%arg0: i32) -> (i32, i32) {
    %c0_i32 = arith.constant 0 : i32
    %c0_i32_0 = arith.constant 0 : i32
    return %arg0, %c0_i32 : i32, i32
  }
  func.func @transform_4(%arg0: i32) -> (i32, i32) {
    %c0_i32 = arith.constant 0 : i32
    %c0_i32_0 = arith.constant 0 : i32
    return %arg0, %c0_i32 : i32, i32
  }
}

</mosaic_0001>

<bundles_post_ra>
// kernel: cross_modal_attention.15
= control target key start
LH: loop header
LB: loop body
LE: loop exit
PB: predicated region body
PF: predicated region fallthrough
CT: control target
= control target key end

     0   :  { %v118_v0 = vmov 0.0   ;;  %vm119_vm0 = vmmov 0   ;;  %vm44_vm1 = vcmask 261120   ;;  %s175_s1 = inlined_call_operand.vmem [shape: bf16[32,32], index: 1, kind: input, shape index: {}]   ;;  %s176_s0 = inlined_call_operand.vmem [shape: f32[16,32], index: 0, kind: input, shape index: {}]   ;;  %s177_s2 = inlined_call_operand.vmem [shape: f32[1,32], index: 2, kind: input, shape index: {}]   ;;  %s178_s3 = inlined_call_operand.vmem [shape: f32[16,32], index: 3, kind: input, shape index: {}]   ;;  %s179_s4 = inlined_call_operand.vmem [shape: f32[16,32], index: 4, kind: output, shape index: {}]  }
   0x1   :  { %106 = vmatprep.subr.bf16.mxu0 %v118_v0  ;;  %v116_v1 = vld [vmem:[%s175_s1] sm:$0xff]   ;;  %110 = vmatprep.mubr.msk.bf16.mxu0 %vm119_vm0, %v118_v0  ;;  %v117_v2 = vld [vmem:[%s175_s1 + $0x8] sm:$0xff]  }
   0x2   :  { %107 = vmatpush3.bf16.msra.mxu0 %v116_v1  ;;  %v18_v3 = vld [vmem:[%s176_s0] sm:$0xff]  ;;  %v19_v4 = vld [vmem:[%s176_s0 + $0x8] sm:$0xff] }
   0x3   :  { %108 = vmatprep.subr.bf16.mxu0 %v118_v0  ;;  %v20_v5 = vpack.c.bf16 %v19_v4, %v18_v3  ;;  %v99_v6 = vld [vmem:[%s177_s2] ss:$0 sm:$0xff]  ;;  %v90_v12 = vld [vmem:[%s178_s3 + $0x8] sm:$0xff] }
   0x4   :  { %v89_v8 = vld [vmem:[%s178_s3] sm:$0xff] }
   0x6   :  { %109 = vmatpush3.bf16.msra.mxu0 %v117_v2 }
   0x9   :  { %111 = vmatmul.mubr.msk.bf16.vlgmr.msra.gmra.mrb[0].mxu0 %vm44_vm1, %v20_v5 }
  0xdc   :  { %v82_v7 = vpop.f32.mrb[0].mxu0 }
  0xdd   :  { %v83_v9 = vadd.f32 %v99_v6, %v82_v7  ;;  %v112_v10 = vpop.f32.mrb[1].mxu0 }
  0xde   :  { %v85_v11 = vpop.f32.mrb[2].mxu0 }
  0xdf   :  { %v91_v13 = vadd.f32 %v89_v8, %v83_v9  ;;  %v86_v14 = vadd.f32 %v99_v6, %v85_v11  ;;  %v113_v15 = vpop.f32.mrb[3].mxu0 }
  0xe1   :  { %93 = vst.msk [vmem:[%s179_s4] sm:$0xff] %vm44_vm1, %v91_v13  ;;  %v92_v16 = vadd.f32 %v90_v12, %v86_v14 }
  0xe3   :  { %94 = vst.msk [vmem:[%s179_s4 + $0x8] sm:$0xff] %vm44_vm1, %v92_v16 }

// kernel: cross_modal_attention.18
= control target key start
LH: loop header
LB: loop body
LE: loop exit
PB: predicated region body
PF: predicated region fallthrough
CT: control target
= control target key end

     0   :  { %vm23_vm0 = vcmask 261120   ;;  %v248_v15 = vmov 0.0   ;;  %vm249_vm1 = vmmov 0   ;;  %s310_s0 = inlined_call_operand.vmem [shape: f32[16,32], index: 0, kind: input, shape index: {}]   ;;  %s311_s3 = inlined_call_operand.vmem [shape: bf16[32,128], index: 3, kind: input, shape index: {}]   ;;  %s312_s1 = inlined_call_operand.vmem [shape: f32[1,32], index: 1, kind: input, shape index: {}]   ;;  %s313_s2 = inlined_call_operand.vmem [shape: f32[1,32], index: 2, kind: input, shape index: {}]   ;;  %s314_s4 = inlined_call_operand.vmem [shape: f32[1,128], index: 4, kind: input, shape index: {}]   ;;  %s315_s5 = inlined_call_operand.vmem [shape: bf16[16,128], index: 5, kind: output, shape index: {}]  }
   0x1   :  { %v21_v0 = vld [vmem:[%s310_s0] sm:$0xff]  ;;  %v22_v1 = vld [vmem:[%s310_s0 + $0x8] sm:$0xff]  ;;  %223 = vmatprep.subr.bf16.mxu0 %v248_v15  ;;  %227 = vmatprep.mubr.msk.bf16.mxu0 %vm249_vm1, %v248_v15 }
   0x2   :  { %v24_v2 = vsel %vm23_vm0, %v21_v0, 0.0  ;;  %v27_v3 = vsel %vm23_vm0, %v22_v1, 0.0  ;;  %v234_v14 = vld [vmem:[%s311_s3] sm:$0xff]   ;;  %v235_v16 = vld [vmem:[%s311_s3 + $0x8] sm:$0xff]  }
   0x3   :  { %25 = vadd.xlane.f32.xlu0 %v24_v2  ;;  %224 = vmatpush3.bf16.msra.mxu0 %v234_v14  ;;  %v205_v25 = vld [vmem:[%s312_s1] ss:$0 sm:$0xff] }
   0x4   :  { %225 = vmatprep.subr.bf16.mxu0 %v248_v15  ;;  %v206_v29 = vld [vmem:[%s313_s2] ss:$0 sm:$0xff]  ;;  %v250_v15 = vmov -1.0  }
   0x5   :  { %v207_v34 = vld [vmem:[%s314_s4] ss:$0 sm:$0xff] }
   0x7   :  { %28 = vadd.xlane.f32.xlu0 %v27_v3  ;;  %226 = vmatpush3.bf16.msra.mxu0 %v235_v16 }
  0x90   :  { %v26_v4 = vpop.xlane.xlu0 %25 }
  0x91   :  { %v31_v5 = vmul.f32 0.03125, %v26_v4 }
  0x93   :  { %v33_v6 = vsub.f32 %v21_v0, %v31_v5 }
  0x94   :  { %v29_v7 = vpop.xlane.xlu0 %28 }
  0x95   :  { %v32_v8 = vmul.f32 0.03125, %v29_v7  ;;  %v35_v9 = vmul.f32 %v33_v6, %v33_v6 }
  0x97   :  { %v34_v10 = vsub.f32 %v22_v1, %v32_v8  ;;  %v37_v11 = vsel %vm23_vm0, %v35_v9, 0.0 }
  0x98   :  { %38 = vadd.xlane.f32.xlu1 %v37_v11 }
  0x99   :  { %v36_v12 = vmul.f32 %v34_v10, %v34_v10 }
  0x9b   :  { %v40_v13 = vsel %vm23_vm0, %v36_v12, 0.0 }
  0x9c   :  { %41 = vadd.xlane.f32.xlu1 %v40_v13 }
 0x125   :  { %v39_v17 = vpop.xlane.xlu1 %38 }
 0x126   :  { %v43_v18 = vmul.f32 0.03125, %v39_v17 }
 0x128   :  { %v45_v19 = vadd.f32 1e-05, %v43_v18 }
 0x129   :  { %v42_v20 = vpop.xlane.xlu1 %41 }
 0x12a   :  { %236 = vrsqrt.f32 %v45_v19  ;;  %v44_v21 = vmul.f32 0.03125, %v42_v20 }
 0x12c   :  { %v46_v22 = vadd.f32 1e-05, %v44_v21 }
 0x12e   :  { %238 = vrsqrt.f32 %v46_v22 }
 0x134   :  { %v237_v23 = vpop.eup %236 }
 0x135   :  { %v49_v24 = vmul.f32 %v237_v23, %v33_v6 }
 0x137   :  { %v58_v28 = vmul.f32 %v205_v25, %v49_v24 }
 0x138   :  { %v239_v26 = vpop.eup %238 }
 0x139   :  { %v50_v27 = vmul.f32 %v239_v26, %v34_v10  ;;  %v67_v31 = vadd.f32 %v206_v29, %v58_v28 }
 0x13b   :  { %v59_v30 = vmul.f32 %v205_v25, %v50_v27 }
 0x13d   :  { %v68_v32 = vadd.f32 %v206_v29, %v59_v30 }
 0x13f   :  { %v69_v33 = vpack.c.bf16 %v68_v32, %v67_v31 }
 0x141   :  { %228 = vmatmul.mubr.msk.bf16.vlgmr.msra.gmra.mrb[0].mxu0 %vm23_vm0, %v69_v33 }
 0x214   :  { %v130_v35 = vpop.f32.mrb[0].mxu0 }
 0x215   :  { %v131_v36 = vadd.f32 %v207_v34, %v130_v35  ;;  %v229_v37 = vpop.f32.mrb[1].mxu0 }
 0x216   :  { %v133_v38 = vpop.f32.mrb[2].mxu0 }
 0x217   :  { %v139_v39 = vmul.f32 0.70710677, %v131_v36  ;;  %v134_v40 = vadd.f32 %v207_v34, %v133_v38  ;;  %v230_v41 = vpop.f32.mrb[3].mxu0  ;;  %v137_v23 = vmul.f32 0.5, %v131_v36 }
 0x219   :  { %v145_v42 = vand.u32 2147483647, %v139_v39  ;;  %v140_v43 = vmul.f32 0.70710677, %v134_v40  ;;  %vm141_vm2 = vcmp.ge.f32.partialorder %v139_v39, 0.0  ;;  %v138_v24 = vmul.f32 0.5, %v134_v40 }
 0x21a   :  { %v143_v16 = vsel %vm141_vm2, 1.0, %v250_v15 }
 0x21b   :  { %v147_v44 = vmul.f32 0.3275911, %v145_v42  ;;  %v146_v45 = vand.u32 2147483647, %v140_v43  ;;  %v173_v49 = vsub.f32 0.0, %v145_v42  ;;  %vm142_vm3 = vcmp.ge.f32.partialorder %v140_v43, 0.0 }
 0x21c   :  { %v144_v20 = vsel %vm142_vm3, 1.0, %v250_v15 }
 0x21d   :  { %v149_v46 = vadd.f32 1.0, %v147_v44  ;;  %v148_v47 = vmul.f32 0.3275911, %v146_v45  ;;  %v174_v50 = vsub.f32 0.0, %v146_v45  ;;  %v175_v52 = vmul.f32 %v173_v49, %v145_v42 }
 0x21f   :  { %240 = vrcp.f32 %v149_v46  ;;  %v150_v48 = vadd.f32 1.0, %v148_v47  ;;  %v176_v56 = vmul.f32 %v174_v50, %v146_v45  ;;  %v177_v57 = vmul.f32 1.442695, %v175_v52 }
 0x221   :  { %242 = vrcp.f32 %v150_v48  ;;  %v179_v62 = vmul.f32 1.442695, %v176_v56 }
 0x222   :  { %244 = vpow2.f32 %v177_v57 }
 0x223   :  { %246 = vpow2.f32 %v179_v62 }
 0x229   :  { %v241_v51 = vpop.eup %240 }
 0x22a   :  { %v155_v53 = vmul.f32 1.0614054, %v241_v51 }
 0x22b   :  { %v243_v54 = vpop.eup %242 }
 0x22c   :  { %v157_v55 = vadd.f32 -1.4531521, %v155_v53  ;;  %v156_v58 = vmul.f32 1.0614054, %v243_v54  ;;  %v245_v9 = vpop.eup %244 }
 0x22d   :  { %v247_v13 = vpop.eup %246 }
 0x22e   :  { %v159_v59 = vmul.f32 %v241_v51, %v157_v55  ;;  %v158_v60 = vadd.f32 -1.4531521, %v156_v58 }
 0x230   :  { %v161_v61 = vadd.f32 1.4214138, %v159_v59  ;;  %v160_v63 = vmul.f32 %v243_v54, %v158_v60 }
 0x232   :  { %v163_v0 = vmul.f32 %v241_v51, %v161_v61  ;;  %v162_v1 = vadd.f32 1.4214138, %v160_v63 }
 0x234   :  { %v165_v2 = vadd.f32 -0.28449672, %v163_v0  ;;  %v164_v3 = vmul.f32 %v243_v54, %v162_v1 }
 0x236   :  { %v167_v4 = vmul.f32 %v241_v51, %v165_v2  ;;  %v166_v5 = vadd.f32 -0.28449672, %v164_v3 }
 0x238   :  { %v169_v6 = vadd.f32 0.2548296, %v167_v4  ;;  %v168_v7 = vmul.f32 %v243_v54, %v166_v5 }
 0x23a   :  { %v171_v8 = vmul.f32 %v241_v51, %v169_v6  ;;  %v170_v10 = vadd.f32 0.2548296, %v168_v7 }
 0x23c   :  { %v181_v11 = vmul.f32 %v245_v9, %v171_v8  ;;  %v172_v12 = vmul.f32 %v243_v54, %v170_v10 }
 0x23e   :  { %v183_v14 = vsub.f32 1.0, %v181_v11  ;;  %v182_v17 = vmul.f32 %v247_v13, %v172_v12 }
 0x240   :  { %v185_v18 = vmul.f32 %v183_v14, %v143_v16  ;;  %v184_v19 = vsub.f32 1.0, %v182_v17 }
 0x242   :  { %v187_v21 = vadd.f32 1.0, %v185_v18  ;;  %v186_v22 = vmul.f32 %v184_v19, %v144_v20 }
 0x244   :  { %v188_v25 = vadd.f32 1.0, %v186_v22  ;;  %v189_v26 = vmul.f32 %v187_v21, %v137_v23 }
 0x246   :  { %v190_v27 = vmul.f32 %v188_v25, %v138_v24 }
 0x248   :  { %v218_v28 = vpack.c.bf16 %v190_v27, %v189_v26 }
 0x24a   :  { %219 = vst [vmem:[%s315_s5] sm:$0xff] %v218_v28  }

// kernel: cross_modal_attention.11
= control target key start
LH: loop header
LB: loop body
LE: loop exit
PB: predicated region body
PF: predicated region fallthrough
CT: control target
= control target key end

     0   :  { %vm26_vm0 = vcmask 261120   ;;  %v199_v15 = vmov 0.0   ;;  %vm200_vm1 = vmmov 0   ;;  %s202_s14 = smov 96   ;;  %s293_s0 = inlined_call_operand.vmem [shape: f32[16,32], index: 0, kind: input, shape index: {}]   ;;  %s294_s3 = inlined_call_operand.vmem [shape: bf16[32,96], index: 3, kind: input, shape index: {}]   ;;  %s295_s1 = inlined_call_operand.vmem [shape: f32[1,32], index: 1, kind: input, shape index: {}]   ;;  %s296_s2 = inlined_call_operand.vmem [shape: f32[1,32], index: 2, kind: input, shape index: {}]   ;;  %s297_s4 = inlined_call_operand.vmem [shape: f32[1,96], index: 4, kind: input, shape index: {}]   ;;  %s298_s5 = inlined_call_operand.vmem [shape: f32[16,32], index: 5, kind: output, shape index: {0}]   ;;  %s299_s7 = inlined_call_operand.vmem [shape: f32[16,32], index: 7, kind: output, shape index: {2}]   ;;  %s300_s6 = inlined_call_operand.vmem [shape: f32[16,32], index: 6, kind: output, shape index: {1}]  }
   0x1   :  { %v24_v0 = vld [vmem:[%s293_s0] sm:$0xff]  ;;  %v25_v1 = vld [vmem:[%s293_s0 + $0x8] sm:$0xff]  ;;  %181 = vmatprep.subr.bf16.mxu0 %v199_v15  ;;  %185 = vmatprep.mubr.msk.bf16.mxu0 %vm200_vm1, %v199_v15 }
   0x2   :  { %v27_v2 = vsel %vm26_vm0, %v24_v0, 0.0  ;;  %v30_v3 = vsel %vm26_vm0, %v25_v1, 0.0  ;;  %v193_v14 = vld [vmem:[%s294_s3] sm:$0xff]   ;;  %v194_v16 = vld [vmem:[%s294_s3 + $0x8] sm:$0xff]  }
   0x3   :  { %28 = vadd.xlane.f32.xlu0 %v27_v2  ;;  %182 = vmatpush3.bf16.msra.mxu0 %v193_v14  ;;  %v172_v25 = vld [vmem:[%s295_s1] ss:$0 sm:$0xff] }
   0x4   :  { %183 = vmatprep.subr.bf16.mxu0 %v199_v15  ;;  %v173_v29 = vld [vmem:[%s296_s2] ss:$0 sm:$0xff]  ;;  %s201_s2 = smov 64  }
   0x5   :  { %v174_v34 = vld [vmem:[%s297_s4] ss:$0 sm:$0xff] }
   0x7   :  { %31 = vadd.xlane.f32.xlu0 %v30_v3  ;;  %184 = vmatpush3.bf16.msra.mxu0 %v194_v16 }
  0x90   :  { %v29_v4 = vpop.xlane.xlu0 %28 }
  0x91   :  { %v34_v5 = vmul.f32 0.03125, %v29_v4 }
  0x93   :  { %v36_v6 = vsub.f32 %v24_v0, %v34_v5 }
  0x94   :  { %v32_v7 = vpop.xlane.xlu0 %31 }
  0x95   :  { %v35_v8 = vmul.f32 0.03125, %v32_v7  ;;  %v38_v9 = vmul.f32 %v36_v6, %v36_v6 }
  0x97   :  { %v37_v10 = vsub.f32 %v25_v1, %v35_v8  ;;  %v40_v11 = vsel %vm26_vm0, %v38_v9, 0.0 }
  0x98   :  { %41 = vadd.xlane.f32.xlu1 %v40_v11 }
  0x99   :  { %v39_v12 = vmul.f32 %v37_v10, %v37_v10 }
  0x9b   :  { %v43_v13 = vsel %vm26_vm0, %v39_v12, 0.0 }
  0x9c   :  { %44 = vadd.xlane.f32.xlu1 %v43_v13 }
 0x125   :  { %v42_v17 = vpop.xlane.xlu1 %41 }
 0x126   :  { %v46_v18 = vmul.f32 0.03125, %v42_v17 }
 0x128   :  { %v48_v19 = vadd.f32 1e-05, %v46_v18 }
 0x129   :  { %v45_v20 = vpop.xlane.xlu1 %44 }
 0x12a   :  { %195 = vrsqrt.f32 %v48_v19  ;;  %v47_v21 = vmul.f32 0.03125, %v45_v20 }
 0x12c   :  { %v49_v22 = vadd.f32 1e-05, %v47_v21 }
 0x12e   :  { %197 = vrsqrt.f32 %v49_v22 }
 0x134   :  { %v196_v23 = vpop.eup %195 }
 0x135   :  { %v52_v24 = vmul.f32 %v196_v23, %v36_v6 }
 0x137   :  { %v61_v28 = vmul.f32 %v172_v25, %v52_v24 }
 0x138   :  { %v198_v26 = vpop.eup %197 }
 0x139   :  { %v53_v27 = vmul.f32 %v198_v26, %v37_v10  ;;  %v70_v31 = vadd.f32 %v173_v29, %v61_v28 }
 0x13b   :  { %v62_v30 = vmul.f32 %v172_v25, %v53_v27 }
 0x13d   :  { %v71_v32 = vadd.f32 %v173_v29, %v62_v30 }
 0x13f   :  { %v72_v33 = vpack.c.bf16 %v71_v32, %v70_v31 }
 0x141   :  { %186 = vmatmul.mubr.msk.bf16.vlgmr.msra.gmra.mrb[0].mxu0 %vm26_vm0, %v72_v33 }
 0x214   :  { %v133_v35 = vpop.f32.mrb[0].mxu0 }
 0x215   :  { %v134_v36 = vadd.f32 %v174_v34, %v133_v35  ;;  %v187_v37 = vpop.f32.mrb[1].mxu0 }
 0x216   :  { %v136_v38 = vpop.f32.mrb[2].mxu0 }
 0x217   :  { %140 = vst.msk [vmem:[%s298_s5] sm:$0xff] %vm26_vm0, %v134_v36  ;;  %v137_v39 = vadd.f32 %v174_v34, %v136_v38  ;;  %152 = vrot.lane.b32.xlu1 %v134_v36, %s201_s2  ;;  %144 = vrot.lane.b32.xlu0 %v134_v36, %s202_s14  ;;  %v188_v40 = vpop.f32.mrb[3].mxu0 }
 0x219   :  { %141 = vst.msk [vmem:[%s298_s5 + $0x8] sm:$0xff] %vm26_vm0, %v137_v39 }
 0x21b   :  { %146 = vrot.lane.b32.xlu1 %v137_v39, %s202_s14 }
 0x21f   :  { %154 = vrot.lane.b32.xlu1 %v137_v39, %s201_s2 }
 0x289   :  { %v153_v41 = vpop.permute.xlu1 %152  ;;  %v145_v42 = vpop.permute.xlu0 %144 }
 0x28a   :  { %158 = vst.msk [vmem:[%s299_s7] sm:$0xff] %vm26_vm0, %v153_v41  ;;  %150 = vst.msk [vmem:[%s300_s6] sm:$0xff] %vm26_vm0, %v145_v42 }
 0x28d   :  { %v147_v43 = vpop.permute.xlu1 %146 }
 0x28e   :  { %151 = vst.msk [vmem:[%s300_s6 + $0x8] sm:$0xff] %vm26_vm0, %v147_v43 }
 0x291   :  { %v155_v44 = vpop.permute.xlu1 %154 }
 0x292   :  { %159 = vst.msk [vmem:[%s299_s7 + $0x8] sm:$0xff] %vm26_vm0, %v155_v44 }

// kernel: cross_modal_attention.13
= control target key start
LH: loop header
LB: loop body
LE: loop exit
PB: predicated region body
PF: predicated region fallthrough
CT: control target
= control target key end

     0   :  { %10 = vsyncpa [#allocation3], 0  ;;  %s1399_s0 = inlined_call_operand.vmem [shape: f32[2,8,32], index: 0, kind: input, shape index: {}]   ;;  %s1400_s1 = inlined_call_operand.vmem [shape: f32[2,8,32], index: 1, kind: input, shape index: {}]   ;;  %s1401_s2 = inlined_call_operand.vmem [shape: f32[2,8,32], index: 2, kind: input, shape index: {}]   ;;  %s1402_s3 = inlined_call_operand.vmem [shape: f32[2,8,32], index: 3, kind: output, shape index: {0}]   ;;  %s1403_s4 = inlined_call_operand.hbm [shape: f32[2,4,8,8], index: 4, kind: output, shape index: {1}]  }
   0x1   :  { %12 = vsyncpa [#allocation3 + $0x1], 0  ;;  %s1185_s15 = smov 0   ;;  %s1187_s16 = smov 0  }
   0x2   :  { %s1189_s17 = smov 0   ;;  %s1191_s18 = smov 0  }
   0x3   :  { %s1193_s19 = smov 0   ;;  %s1195_s20 = smov 0  }
   0x4 LB: > { %s899_s21 = sadd.s32 4294967295, %s1148_s20   ;;  %s900_s22 = sadd.s32 4294967294, %s1148_s20   ;;  %s1148_s20 = sphi %s1195_s20, %s18_s20   ;;  %s1144_s19 = sphi %s1193_s19, %s1410_s19   ;;  %s1140_s18 = sphi %s1191_s18, %s1409_s18   ;;  %s1136_s17 = sphi %s1189_s17, %s1408_s17   ;;  %s1132_s16 = sphi %s1187_s16, %s1407_s16   ;;  %s1128_s15 = sphi %s1185_s15, %s1406_s15  }
   0x5   : > { %s30_s23 = sadd.s32 1, %s1144_s19  ;;  %s147_s24 = sadd.s32 1, %s1136_s17 }
   0x6   : > { %p32_p0 = scmp.ge.s32.totalorder %s30_s23, 2  ;;  %p157_p1 = scmp.ne.s32.totalorder %s1136_s17, %s1132_s16 }
   0x7   : > { %p158_p2 = scmp.eq.s32.totalorder %s899_s21, 1  ;;  %p163_p3 = scmp.ne.s32.totalorder %s1132_s16, %s1128_s15 }
   0x8   : > { %s1412_s23 = smov (%p32_p0, %s30_s23), 0  ;;  %p164_p5 = scmp.eq.s32.totalorder %s900_s22, 1 }
   0x9   : > { %p1225_p4 = por %p158_p2, %p157_p1  ;;  %s142_s26 = ssub.s32 %s1144_s19, %s1412_s23 }
   0xa   : > { %p903_p6 = scmp.ge.s32.totalorder %s1148_s20, 1  ;;  %p145_p7 = scmp.eq.s32.totalorder %s142_s26, 0 }
   0xb   : > { %p1232_p8 = por %p164_p5, %p163_p3  ;;  %p206_p9 = scmp.lt.s32.totalorder %s1148_s20, 3 }
   0xc   : > { %s1238_s28 = scalar_select %p145_p7, %s1136_s17, %s147_s24  }
   0xd   : > { %p207_p10 = pnand %p903_p6, %p206_p9 }
   0xe   : > { %p249_p11 = scmp.lt.s32.totalorder (!%p207_p10), %s1140_s18, 1  ;;  %v1150_v0 = vmov (!%p207_p10), 0.0   ;;  %vm1151_vm0 = vmmov (!%p207_p10), 0   ;;  %vm279_vm1 = vcmask (!%p207_p10), 64512   ;;  %s1152_s11 = smov (!%p207_p10), 120   ;;  %vm342_vm2 = vcmask (!%p207_p10), 1043456  }
   0xf   : > { %210 = sbr.rel (%p207_p10) target bundleno = 1483 (0x5cb), region = 32  ;;  %942 = vmatprep.subr.bf16.mxu0 (!%p207_p10), %v1150_v0  ;;  %944 = vmatprep.mubr.msk.bf16.mxu0 (!%p207_p10), %vm1151_vm0, %v1150_v0  ;;  %s1153_s12 = smov (!%p207_p10), 112  }
  0x10   : > { %948 = vmatprep.subr.bf16.mxu1 (!%p207_p10), %v1150_v0  ;;  %950 = vmatprep.mubr.msk.bf16.mxu1 (!%p207_p10), %vm1151_vm0, %v1150_v0  ;;  %s1154_s13 = smov (!%p207_p10), 104   ;;  %s246_s24 = sand.u32 (!%p207_p10), 1, %s1132_s16  }
  0x11   : > { %s904_s26 = sshll.u32 (!%p207_p10), %s246_s24, 5  ;;  %s1155_s5 = smov (!%p207_p10), 8  }
  0x12   : > { %s1156_s6 = smov (!%p207_p10), 16  }
  0x16   : > { %s250_s29 = scalar_select %p249_p11, %s1140_s18, 1 }
  0x18   : > { %s1248_s30 = sshll.u32 %s250_s29, 3  ;;  %s1284_s29 = scalar_lea.vmem [#allocation2], %s904_s26 }
  0x19   : > { %s259_s7 = scalar_lea.vmem %s1400_s1, %s1248_s30  ;;  %s255_s10 = scalar_lea.vmem %s1399_s0, %s1248_s30 }
  0x1a   : > { %v275_v1 = vld [vmem:[%s259_s7] sm:$0xff]  ;;  %s263_s22 = scalar_lea.vmem %s1401_s2, %s1248_s30  ;;  %s925_s7 = sshll.u32 %s1140_s18, 9 }
  0x1b   : > { %v272_v2 = vld [vmem:[%s255_s10] sm:$0xff]  ;;  %v276_v3 = vpack.c.bf16 %v275_v1, %v275_v1  ;;  %s769_s8 = sshll.u32 %s1284_s29, 4  ;;  %s1157_s18 = smov [#allocation2]   ;;  %s1342_s8 = int_to_ptr.vmem [resolvable:$true] %s769_s8 }
  0x1c   : > { %v273_v5 = vmul.f32 0.35355338, %v272_v2  ;;  %v277_v17 = vld [vmem:[%s263_s22] sm:$0xff]  ;;  %s1074_s14 = sshll.u32 %s1157_s18, 4  ;;  %s1075_s14 = int_to_ptr.vmem [resolvable:$false] %s1074_s14 }
  0x1d   : > { %v284_v4 = vsel %vm279_vm1, %v276_v3, 0  ;;  %390 = vrot.lane.b32.xlu1 %v276_v3, %s1152_s11  ;;  %v1274_v18 = vpack.c.bf16 %v277_v17, %v277_v17  ;;  %s1076_s21 = scalar_lea.vmem %s1075_s14, 1024  ;;  %p1077_p1 = scmp.lt.s32.totalorder %s1342_s8, %s1075_s14 }
  0x1e   : > { %943 = vmatpush3.bf16.xpose.msra.mxu0 %v284_v4  ;;  %v274_v6 = vpack.c.bf16 %v273_v5, %v273_v5 }
  0x1f   : > { %960 = vmatprep.subr.bf16.mxu0 %v1150_v0  ;;  %v344_v19 = vsel %vm342_vm2, %v1274_v18, 0 }
  0x20   : > { %949 = vmatpush3.bf16.msra.mxu1 %v344_v19 }
  0x21   : > { %387 = vrot.lane.b32.xlu1 %v274_v6, %s1152_s11  ;;  %954 = vmatprep.subr.bf16.mxu1 %v1150_v0 }
  0x25   : > { %945 = vmatmul.mubr.msk.bf16.vlgmr.msra.gmra.mrb[0].mxu0 %vm279_vm1, %v274_v6  ;;  %501 = vrot.lane.b32.xlu1 %v274_v6, %s1153_s12 }
  0x26   : > { %962 = vmatprep.mubr.msk.bf16.mxu0 %vm1151_vm0, %v1150_v0 }
  0x29   : > { %615 = vrot.lane.b32.xlu1 %v276_v3, %s1154_s13 }
  0x2d   : > { %613 = vrot.lane.b32.xlu1 %v274_v6, %s1154_s13 }
  0x8f   : > { %v391_v22 = vpop.permute.xlu1 %390 }
  0x90   : > { %v396_v24 = vsel %vm279_vm1, %v391_v22, 0 }
  0x93   : > { %v388_v26 = vpop.permute.xlu1 %387 }
  0x97   : > { %v502_v28 = vpop.permute.xlu1 %501 }
  0x9b   : > { %v616_v30 = vpop.permute.xlu1 %615 }
  0x9c   : > { %v621_v31 = vsel %vm279_vm1, %v616_v30, 0 }
  0x9f   : > { %v614_v32 = vpop.permute.xlu1 %613 }
  0xf8   : > { %v320_v7 = vpop.f32.mrb[0].mxu0 }
  0xf9   : > { %v946_v8 = vpop.f32.mrb[1].mxu0  ;;  %v326_v9 = vsel %vm279_vm1, %v320_v7, -inf }
  0xfa   : > { %327 = vmax.xlane.f32.xlu0 %v326_v9  ;;  %v323_v10 = vpop.f32.mrb[2].mxu0 }
  0xfb   : > { %v947_v11 = vpop.f32.mrb[3].mxu0 }
 0x187   : > { %v328_v12 = vpop.xlane.xlu0 %327 }
 0x188   : > { %v329_v13 = vsub.f32 %v320_v7, %v328_v12 }
 0x18a   : > { %v330_v14 = vmul.f32 1.442695, %v329_v13 }
 0x18c   : > { %1054 = vpow2.f32 %v330_v14 }
 0x196   : > { %v1055_v15 = vpop.eup %1054 }
 0x197   : > { %v332_v16 = vsel %vm279_vm1, %v1055_v15, 0.0 }
 0x198   : > { %333 = vadd.xlane.f32.xlu0 %v332_v16 }
 0x1ae   : > { %503 = vrot.lane.b32.xlu0 %v276_v3, %s1153_s12 }
 0x225   : > { %v334_v20 = vpop.xlane.xlu0 %333 }
 0x226   : > { %1056 = vrcp.f32 %v334_v20 }
 0x229   : > { %v504_v27 = vpop.permute.xlu0 %503 }
 0x22a   : > { %v509_v29 = vsel %vm279_vm1, %v504_v27, 0 }
 0x230   : > { %v1057_v21 = vpop.eup %1056 }
 0x231   : > { %v336_v23 = vmul.f32 %v1057_v21, %v1055_v15 }
 0x233   : > { %337 = vst.msk [vmem:[%s1284_s29] sm:$0xff] %vm279_vm1, %v336_v23  ;;  %v338_v25 = vpack.c.bf16 %v336_v23, %v336_v23 }
 0x235   : > { %951 = vmatmul.mubr.msk.bf16.vlgmr.msra.gmra.mrb[0].mxu1 %vm279_vm1, %v338_v25 }
 0x236   : > { %955 = vmatpush3.bf16.xpose.msra.mxu1 %v396_v24  ;;  %956 = vmatprep.mubr.msk.bf16.mxu1 %vm1151_vm0, %v1150_v0 }
 0x237   : > { %966 = vmatprep.subr.bf16.mxu1 %v1150_v0 }
 0x23d   : > { %957 = vmatmul.mubr.msk.bf16.vlgmr.msra.gmra.mrb[4].mxu1 %vm279_vm1, %v388_v26 }
 0x23e   : > { %967 = vmatpush3.bf16.xpose.msra.mxu1 %v509_v29  ;;  %968 = vmatprep.mubr.msk.bf16.mxu1 %vm1151_vm0, %v1150_v0 }
 0x23f   : > { %978 = vmatprep.subr.bf16.mxu1 %v1150_v0 }
 0x245   : > { %969 = vmatmul.mubr.msk.bf16.vlgmr.msra.gmra.mrb[8].mxu1 %vm279_vm1, %v502_v28 }
 0x246   : > { %979 = vmatpush3.bf16.xpose.msra.mxu1 %v621_v31  ;;  %980 = vmatprep.mubr.msk.bf16.mxu1 %vm1151_vm0, %v1150_v0 }
 0x24d   : > { %981 = vmatmul.mubr.msk.bf16.vlgmr.msra.gmra.mrb[12].mxu1 %vm279_vm1, %v614_v32 }
 0x308   : > { %v1302_v33 = vpop.f32.mrb[0].mxu1 }
 0x309   : > { %v952_v34 = vpop.f32.mrb[1].mxu1 }
 0x30a   : > { %v383_v35 = vpop.f32.mrb[2].mxu1 }
 0x30b   : > { %v953_v36 = vpop.f32.mrb[3].mxu1 }
 0x310   : > { %v432_v37 = vpop.f32.mrb[4].mxu1 }
 0x311   : > { %v958_v38 = vpop.f32.mrb[5].mxu1  ;;  %v438_v39 = vsel %vm279_vm1, %v432_v37, -inf }
 0x312   : > { %439 = vmax.xlane.f32.xlu1 %v438_v39  ;;  %v435_v40 = vpop.f32.mrb[6].mxu1 }
 0x313   : > { %v959_v41 = vpop.f32.mrb[7].mxu1 }
 0x318   : > { %v545_v42 = vpop.f32.mrb[8].mxu1 }
 0x319   : > { %v551_v43 = vsel %vm279_vm1, %v545_v42, -inf  ;;  %v970_v44 = vpop.f32.mrb[9].mxu1 }
 0x31a   : > { %552 = vmax.xlane.f32.xlu0 %v551_v43  ;;  %v548_v45 = vpop.f32.mrb[10].mxu1 }
 0x31b   : > { %v971_v46 = vpop.f32.mrb[11].mxu1 }
 0x320   : > { %v657_v47 = vpop.f32.mrb[12].mxu1 }
 0x321   : > { %v663_v48 = vsel %vm279_vm1, %v657_v47, -inf  ;;  %v982_v49 = vpop.f32.mrb[13].mxu1 }
 0x322   : > { %664 = vmax.xlane.f32.xlu1 %v663_v48  ;;  %v660_v50 = vpop.f32.mrb[14].mxu1 }
 0x323   : > { %v983_v51 = vpop.f32.mrb[15].mxu1 }
 0x39f   : > { %v440_v52 = vpop.xlane.xlu1 %439 }
 0x3a0   : > { %v441_v53 = vsub.f32 %v432_v37, %v440_v52 }
 0x3a2   : > { %v442_v54 = vmul.f32 1.442695, %v441_v53 }
 0x3a4   : > { %1058 = vpow2.f32 %v442_v54 }
 0x3a7   : > { %v553_v55 = vpop.xlane.xlu0 %552 }
 0x3a8   : > { %v554_v56 = vsub.f32 %v545_v42, %v553_v55 }
 0x3aa   : > { %v555_v57 = vmul.f32 1.442695, %v554_v56 }
 0x3ac   : > { %1060 = vpow2.f32 %v555_v57 }
 0x3ae   : > { %v1059_v58 = vpop.eup %1058 }
 0x3af   : > { %v444_v59 = vsel %vm279_vm1, %v1059_v58, 0.0  ;;  %v665_v62 = vpop.xlane.xlu1 %664 }
 0x3b0   : > { %445 = vadd.xlane.f32.xlu1 %v444_v59  ;;  %v666_v63 = vsub.f32 %v657_v47, %v665_v62 }
 0x3b2   : > { %v667_v1 = vmul.f32 1.442695, %v666_v63 }
 0x3b4   : > { %1062 = vpow2.f32 %v667_v1 }
 0x3b6   : > { %v1061_v60 = vpop.eup %1060 }
 0x3b7   : > { %v557_v61 = vsel %vm279_vm1, %v1061_v60, 0.0 }
 0x3b8   : > { %558 = vadd.xlane.f32.xlu0 %v557_v61 }
 0x3be   : > { %v1063_v2 = vpop.eup %1062 }
 0x3bf   : > { %v669_v3 = vsel %vm279_vm1, %v1063_v2, 0.0 }
 0x3c1   : > { %565 = vrot.lane.b32.xlu1 %v1274_v18, %s1153_s12  ;;  %s1346_s12 = scalar_lea.sflag [#allocation3], %s246_s24 }
 0x3ce   : > { %453 = vrot.lane.b32.xlu0 %v1274_v18, %s1152_s11  ;;  %s1340_s11 = scalar_lea.hbm %s1403_s4, %s925_s7 }
 0x3e5   : > { %670 = vadd.xlane.f32.xlu1 %v669_v3 }
 0x3f6   : > { %677 = vrot.lane.b32.xlu1 %v1274_v18, %s1154_s13  ;;  %s1070_s13 = scalar_lea.vmem %s1342_s8, 512 }
 0x3f7   : > { %p1071_p12 = scmp.ne.s32.totalorder %s1342_s8, %s1070_s13  ;;  %p1078_p2 = scmp.lt.s32.totalorder %s1076_s21, %s1070_s13 }
 0x3f9   : > { %p1072_p13 = pnand %p1071_p12, %p1225_p4  ;;  %p1079_p3 = por %p1078_p2, %p1077_p1 }
 0x3fb   : > { %p1073_p0 = pneg %p1072_p13 }
 0x3fd   : > { %p1080_p5 = pnand %p1079_p3, %p1073_p0 }
 0x43d   : > { %v446_v4 = vpop.xlane.xlu1 %445 }
 0x43e   : > { %1064 = vrcp.f32 %v446_v4 }
 0x441   : > { %v566_v10 = vpop.permute.xlu1 %565 }
 0x442   : > { %v571_v12 = vsel %vm342_vm2, %v566_v10, 0 }
 0x445   : > { %v559_v5 = vpop.xlane.xlu0 %558 }
 0x446   : > { %1066 = vrcp.f32 %v559_v5 }
 0x448   : > { %v1065_v6 = vpop.eup %1064 }
 0x449   : > { %v448_v7 = vmul.f32 %v1065_v6, %v1059_v58  ;;  %v454_v8 = vpop.permute.xlu0 %453 }
 0x44a   : > { %v459_v9 = vsel %vm342_vm2, %v454_v8, 0 }
 0x44b   : > { %912 = vst.msk [vmem:[%s1284_s29 + $0x8] sm:$0xff] %vm279_vm1, %v448_v7  ;;  %961 = vmatpush3.bf16.msra.mxu0 %v459_v9  ;;  %v451_v11 = vpack.c.bf16 %v448_v7, %v448_v7 }
 0x44c   : > { %972 = vmatprep.subr.bf16.mxu0 %v1150_v0 }
 0x44e   : > { %963 = vmatmul.mubr.msk.bf16.vlgmr.msra.gmra.mrb[4].mxu0 %vm279_vm1, %v451_v11 }
 0x44f   : > { %973 = vmatpush3.bf16.msra.mxu0 %v571_v12  ;;  %974 = vmatprep.mubr.msk.bf16.mxu0 %vm1151_vm0, %v1150_v0 }
 0x450   : > { %v1067_v13 = vpop.eup %1066  ;;  %984 = vmatprep.subr.bf16.mxu0 %v1150_v0 }
 0x451   : > { %v561_v14 = vmul.f32 %v1067_v13, %v1061_v60 }
 0x453   : > { %915 = vst.msk [vmem:[%s1284_s29 + $0x10] sm:$0xff] %vm279_vm1, %v561_v14  ;;  %v564_v15 = vpack.c.bf16 %v561_v14, %v561_v14 }
 0x456   : > { %975 = vmatmul.mubr.msk.bf16.vlgmr.msra.gmra.mrb[8].mxu0 %vm279_vm1, %v564_v15 }
 0x457   : > { %986 = vmatprep.mubr.msk.bf16.mxu0 %vm1151_vm0, %v1150_v0 }
 0x472   : > { %v671_v16 = vpop.xlane.xlu1 %670 }
 0x473   : > { %1068 = vrcp.f32 %v671_v16 }
 0x476   : > { %v678_v17 = vpop.permute.xlu1 %677 }
 0x477   : > { %v683_v18 = vsel %vm342_vm2, %v678_v17, 0 }
 0x478   : > { %985 = vmatpush3.bf16.msra.mxu0 %v683_v18 }
 0x47d   : > { %v1069_v19 = vpop.eup %1068 }
 0x47e   : > { %v673_v20 = vmul.f32 %v1069_v19, %v1063_v2 }
 0x480   : > { %918 = vst.msk [vmem:[%s1284_s29 + $0x18] sm:$0xff] %vm279_vm1, %v673_v20  ;;  %v676_v21 = vpack.c.bf16 %v673_v20, %v673_v20 }
 0x482   : > { %987 = vmatmul.mubr.msk.bf16.vlgmr.msra.gmra.mrb[12].mxu0 %vm279_vm1, %v676_v21 }
 0x521   : > { %v495_v22 = vpop.f32.mrb[4].mxu0 }
 0x522   : > { %726 = vrot.lane.b32.xlu0 %v495_v22, %s1155_s5  ;;  %v964_v0 = vpop.f32.mrb[5].mxu0 }
 0x523   : > { %v498_v23 = vpop.f32.mrb[6].mxu0 }
 0x524   : > { %v965_v24 = vpop.f32.mrb[7].mxu0 }
 0x529   : > { %v607_v25 = vpop.f32.mrb[8].mxu0 }
 0x52a   : > { %730 = vrot.lane.b32.xlu1 %v607_v25, %s1156_s6  ;;  %v976_v26 = vpop.f32.mrb[9].mxu0 }
 0x52b   : > { %v610_v27 = vpop.f32.mrb[10].mxu0 }
 0x52c   : > { %v977_v28 = vpop.f32.mrb[11].mxu0 }
 0x52d   : > { %1083 = shalt.err (!%p1080_p5)
}
 0x52e   : > { %s1084_s22 = scalar_lea.hbm %s1340_s11, 512  ;;  %s1088_s29 = scalar_lea.hbm %s1403_s4, 1024 }
 0x52f   : > { %p1085_p6 = scmp.ne.s32.totalorder %s1340_s11, %s1084_s22  ;;  %p1089_p10 = scmp.lt.u32.totalorder %s1340_s11, %s1403_s4 }
 0x530   : > { %p1090_p11 = scmp.lt.u32.totalorder %s1088_s29, %s1084_s22  ;;  %p1092_p13 = scmp.lt.u32.totalorder %s1084_s22, %s1340_s11 }
 0x531   : > { %p1086_p7 = pnand %p1085_p6, %p1225_p4 }
 0x532   : > { %p1091_p12 = por %p1090_p11, %p1089_p10 }
 0x533   : > { %p1087_p9 = pneg %p1086_p7 }
 0x534   : > { %p1093_p0 = por %p1092_p13, %p1091_p12 }
 0x536   : > { %p1094_p1 = pnand %p1093_p0, %p1087_p9 }
 0x538   : > { %1097 = shalt.err (!%p1094_p1)
}
 0x539   : > { %s1158_s9 = smov 128   ;;  %s1159_s10 = smov 24   ;;  %vm738_vm3 = vcmask 130048   ;;  %vm740_vm4 = vcmask 195584   ;;  %vm742_vm5 = vcmask 261120  }
 0x53a   : > { %990 = dma.vmem_to_hbm [thread:$0]  (%p1225_p4), %s1342_s8, 512, %s1340_s11, %s1346_s12, %s1158_s9, %s1158_s9, %s1155_s5  }
 0x53b   : > { %s270_s18 = scalar_lea.vmem %s1402_s3, %s1248_s30 }
 0x555   : > { %v719_v29 = vpop.f32.mrb[12].mxu0 }
 0x556   : > { %734 = vrot.lane.b32.xlu0 %v719_v29, %s1159_s10  ;;  %v988_v30 = vpop.f32.mrb[13].mxu0 }
 0x557   : > { %v722_v31 = vpop.f32.mrb[14].mxu0 }
 0x558   : > { %v989_v32 = vpop.f32.mrb[15].mxu0 }
 0x594   : > { %v727_v34 = vpop.permute.xlu0 %726 }
 0x595   : > { %v737_v36 = vsel %vm279_vm1, %v1302_v33, %v727_v34 }
 0x59c   : > { %v731_v35 = vpop.permute.xlu1 %730 }
 0x59d   : > { %v739_v37 = vsel %vm738_vm3, %v737_v36, %v731_v35 }
 0x5c8   : > { %v735_v38 = vpop.permute.xlu0 %734 }
 0x5c9   : > { %v741_v39 = vsel %vm740_vm4, %v739_v37, %v735_v38 }
 0x5ca   : > { %743 = vst.msk [vmem:[%s270_s18] sm:$0xff] %vm742_vm5, %v741_v39 }
 0x5cb PF: > { %p996_p4 = scmp.ge.s32.totalorder %s1148_s20, 2  ;;  %s794_s5 = sand.u32 1, %s1128_s15  }
 0x5cc   : > { %s795_s8 = scalar_lea.sflag [#allocation3], %s794_s5 }
 0x5cd   : > { %p993_p2 = pnand %p996_p4, %p1232_p8 }
 0x5cf   : > { %1123 = dma.done.wait (!%p993_p2), %s795_s8, 512  }
 0x5d0   : > { %1125 = vsyncadd (!%p993_p2), %s795_s8, 4294966784  ;;  %s18_s20 = sadd.s32 1, %s1148_s20   ;;  %s1406_s15 = smov %s1132_s16 }
 0x5d1   : > { %p15_p3 = scmp.ge.s32.totalorder %s18_s20, 4   ;;  %s1407_s16 = smov %s1136_s17 }
 0x5d2   : > { %s1408_s17 = smov %s1238_s28  ;;  %s1409_s18 = smov %s1144_s19 }
 0x5d3   : > { %s1410_s19 = smov %s1412_s23  ;;  %17 = sbr.rel (!%p15_p3) target bundleno = 4 (0x4), region = 88 }
 0x5da   :  { %800 = vsyncpa [#allocation3], 1 }
 0x5db   :  { %802 = vsyncpa [#allocation3 + $0x1], 1 }

// kernel: cross_modal_attention.19
= control target key start
LH: loop header
LB: loop body
LE: loop exit
PB: predicated region body
PF: predicated region fallthrough
CT: control target
= control target key end

     0   :  { %v239_v1 = vmov 0.0   ;;  %vm240_vm0 = vmmov 0   ;;  %s317_s0 = inlined_call_operand.vmem [shape: bf16[16,128], index: 0, kind: input, shape index: {}]   ;;  %s318_s1 = inlined_call_operand.vmem [shape: bf16[128,32], index: 1, kind: input, shape index: {}]   ;;  %s319_s2 = inlined_call_operand.vmem [shape: f32[1,32], index: 2, kind: input, shape index: {}]   ;;  %s320_s3 = inlined_call_operand.vmem [shape: f32[16,32], index: 3, kind: input, shape index: {}]   ;;  %s321_s4 = inlined_call_operand.hbm [shape: f32[16,32], index: 4, kind: output, shape index: {}]  }
   0x1   :  { %v206_v0 = vld [vmem:[%s318_s1] sm:$0xff]   ;;  %181 = vmatprep.subr.bf16.mxu0 %v239_v1  ;;  %v207_v2 = vld [vmem:[%s318_s1 + $0x8] sm:$0xff]   ;;  %197 = vmatprep.mubr.msk.bf16.mxu0 %vm240_vm0, %v239_v1  ;;  %v208_v3 = vld [vmem:[%s318_s1 + $0x10] sm:$0xff]  }
   0x2   :  { %182 = vmatpush3.bf16.msra.mxu0 %v206_v0 }
   0x3   :  { %183 = vmatprep.subr.bf16.mxu0 %v239_v1 }
   0x6   :  { %184 = vmatpush3.bf16.msra.mxu0 %v207_v2 }
   0x7   :  { %185 = vmatprep.subr.bf16.mxu0 %v239_v1 }
   0x8   :  { %9 = vsyncpa [#allocation3], 0  ;;  %v209_v4 = vld [vmem:[%s318_s1 + $0x18] sm:$0xff]   ;;  %v210_v5 = vld [vmem:[%s318_s1 + $0x20] sm:$0xff]   ;;  %s241_s11 = smov [#allocation2]   ;;  %vm143_vm1 = vcmask 261120  }
   0x9   :  { %v211_v6 = vld [vmem:[%s318_s1 + $0x28] sm:$0xff]   ;;  %v212_v7 = vld [vmem:[%s318_s1 + $0x30] sm:$0xff]   ;;  %v213_v8 = vld [vmem:[%s318_s1 + $0x38] sm:$0xff]   ;;  %s151_s1 = sshll.u32 %s241_s11, 4  ;;  %s152_s1 = int_to_ptr.vmem [resolvable:$true] %s151_s1 }
   0xa   :  { %186 = vmatpush3.bf16.msra.mxu0 %v208_v3  ;;  %v214_v9 = vld [vmem:[%s317_s0] sm:$0xff]   ;;  %v140_v16 = vld [vmem:[%s320_s3 + $0x8] sm:$0xff]  ;;  %s215_s0 = scalar_lea.vmem %s152_s1, 256  ;;  %p220_p1 = scmp.lt.s32.totalorder %s152_s1, %s152_s1 }
   0xb   :  { %187 = vmatprep.subr.bf16.mxu0 %v239_v1  ;;  %v162_v10 = vld [vmem:[%s319_s2] ss:$0 sm:$0xff]  ;;  %p216_p0 = scmp.ne.s32.totalorder %s152_s1, %s215_s0  ;;  %p221_p2 = scmp.lt.s32.totalorder %s215_s0, %s215_s0 }
   0xc   :  { %v139_v12 = vld [vmem:[%s320_s3] sm:$0xff] }
   0xd   :  { %p222_p3 = por %p221_p2, %p220_p1 }
   0xe   :  { %188 = vmatpush3.bf16.msra.mxu0 %v209_v4 }
   0xf   :  { %189 = vmatprep.subr.bf16.mxu0 %v239_v1  ;;  %p223_p4 = pnand %p222_p3, %p216_p0 }
  0x12   :  { %190 = vmatpush3.bf16.msra.mxu0 %v210_v5 }
  0x13   :  { %191 = vmatprep.subr.bf16.mxu0 %v239_v1 }
  0x16   :  { %192 = vmatpush3.bf16.msra.mxu0 %v211_v6 }
  0x17   :  { %193 = vmatprep.subr.bf16.mxu0 %v239_v1 }
  0x1a   :  { %194 = vmatpush3.bf16.msra.mxu0 %v212_v7 }
  0x1b   :  { %195 = vmatprep.subr.bf16.mxu0 %v239_v1 }
  0x1e   :  { %196 = vmatpush3.bf16.msra.mxu0 %v213_v8 }
  0x21   :  { %198 = vmatmul.mubr.bf16.vlgmr.msra.gmra.mrb[0].mxu0 %v214_v9 }
  0xf4   :  { %v132_v11 = vpop.f32.mrb[0].mxu0 }
  0xf5   :  { %v133_v13 = vadd.f32 %v162_v10, %v132_v11  ;;  %v199_v14 = vpop.f32.mrb[1].mxu0 }
  0xf6   :  { %v135_v15 = vpop.f32.mrb[2].mxu0 }
  0xf7   :  { %v141_v17 = vadd.f32 %v139_v12, %v133_v13  ;;  %v136_v18 = vadd.f32 %v162_v10, %v135_v15  ;;  %v200_v19 = vpop.f32.mrb[3].mxu0 }
  0xf9   :  { %144 = vst.msk [vmem:[#allocation2] sm:$0xff] %vm143_vm1, %v141_v17  ;;  %v142_v20 = vadd.f32 %v140_v16, %v136_v18 }
  0xfb   :  { %145 = vst.msk [vmem:[#allocation2 + $0x8] sm:$0xff] %vm143_vm1, %v142_v20 }
  0xfc   :  { %226 = shalt.err (!%p223_p4)
}
  0xfd   :  { %s227_s15 = scalar_lea.hbm %s321_s4, 256 }
  0xfe   :  { %p228_p5 = scmp.ne.s32.totalorder %s321_s4, %s227_s15  ;;  %p231_p6 = scmp.lt.u32.totalorder %s227_s15, %s321_s4 }
 0x100   :  { %p233_p7 = pnand %p231_p6, %p228_p5 }
 0x102   :  { %236 = shalt.err (!%p233_p7)
}
 0x103   :  { %s242_s19 = smov 128   ;;  %s243_s20 = smov 8  }
 0x104   :  { %157 = dma.vmem_to_hbm [thread:$0]  %s152_s1, 256, %s321_s4, [#allocation3], %s242_s19, %s242_s19, %s243_s20  }
 0x105   :  { %237 = dma.done.wait [#allocation3], 256  }
 0x106   :  { %238 = vsyncadd [#allocation3], 4294967040 }
 0x107   :  { %161 = vsyncpa [#allocation3], 1 }

</bundles_post_ra>
